<compile_context>
chip_gen: v7x
topology: tpu7x:2x2x1
jax: 0.10.0
libtpu: 0.0.40
codegen_flags: <defaults>
</compile_context>

<pallas_src>
import jax
import jax.numpy as jnp
from jax import lax
from jax.experimental import pallas as pl
from jax.experimental.pallas import tpu as pltpu


def bilstm_kernel(x_ref, slab_ref, whh_ref, o_ref):
    """Fused bidirectional LSTM + Linear(2H, 1) head.

    x_ref:    (seq, 2I)  f32   row t = [x_t | x_{seq-1-t}]  (time reversal pre-folded)
    slab_ref: (2I+4, 8H) f32   rows 0:2I   input-projection weights (fwd cols / bwd cols)
                               row  2I     fused gate bias (b_ih + b_hh, both directions)
                               row  2I+1   head weights, fwd half  (lanes 0:2H, rest 0)
                               row  2I+2   head weights, bwd half  (lanes 0:2H, rest 0)
                               row  2I+3   head bias broadcast
    whh_ref:  (2H, 8H)  bf16   block-diagonal recurrent weights (rows 0:H fwd, H:2H bwd)
    o_ref:    (1, seq)  f32
    Gate/lane layout (H lanes per block): [i_f, i_b, f_f, f_b, g_f, g_b, o_f, o_b]
    """
    seq = x_ref.shape[0]
    two_i = x_ref.shape[1]
    H2, G = whh_ref.shape                       # 2H, 8H

    # ---- Hoisted input projection for both directions / both time orders: one MXU matmul.
    wih = slab_ref[0:two_i, :]                                  # (2I, 8H)
    b = slab_ref[two_i:two_i + 1, :]                            # (1, 8H)
    gx = jnp.dot(x_ref[...], wih, preferred_element_type=jnp.float32) + b   # (seq, 8H)

    whf = slab_ref[two_i + 1:two_i + 2, 0:H2]                   # (1, 2H)  [w_fwd | 0]
    whb = slab_ref[two_i + 2:two_i + 3, 0:H2]                   # (1, 2H)  [0 | w_bwd]
    y = slab_ref[two_i + 3:two_i + 4, 0:seq]                    # (1, seq) init = head bias

    whh = whh_ref[...]                                          # (2H, 8H) bf16, loop-resident

    # Loop-invariant constants (hoisted: JAX does not CSE broadcast_in_dim).
    lane = lax.broadcasted_iota(jnp.int32, (1, G), 1)
    g_mask = (lane >= 2 * H2) & (lane < 3 * H2)                 # tanh lanes (g gates, both dirs)
    pos = lax.broadcasted_iota(jnp.int32, (1, seq), 1)

    c = jnp.zeros((1, H2), jnp.float32)                         # [c_f | c_b]
    h = jnp.zeros((1, H2), jnp.float32)                         # [h_f | h_b]

    for t in range(seq):                                        # seq is small & static: unroll
        # One block-diagonal recurrent matmul for both directions (bf16 operands, f32 acc).
        gates = gx[t:t + 1, :] + jnp.dot(
            h.astype(jnp.bfloat16), whh, preferred_element_type=jnp.float32)   # (1, 8H)

        # One full-vreg sigmoid + one full-vreg tanh; pick g-gate lanes with the mask.
        act = jnp.where(g_mask, jnp.tanh(gates), jax.nn.sigmoid(gates))

        # Align f/g/o gate blocks onto the c/h lanes with XLU rolls (i is already aligned).
        i_g = act[:, 0:H2]
        f_g = pltpu.roll(act, 3 * H2, axis=1)[:, 0:H2]
        g_g = pltpu.roll(act, 2 * H2, axis=1)[:, 0:H2]
        o_g = pltpu.roll(act, 1 * H2, axis=1)[:, 0:H2]

        c = f_g * c + i_g * g_g
        h = o_g * jnp.tanh(c)

        # In-loop N=1 output head: VPU mul + lane reduction, one-hot scatter into y.
        y = y + jnp.where(pos == t,
                          jnp.sum(h * whf, axis=-1, keepdims=True), 0.0)
        y = y + jnp.where(pos == (seq - 1 - t),
                          jnp.sum(h * whb, axis=-1, keepdims=True), 0.0)

    o_ref[...] = y                                              # single (1, seq) store


def _interleave_gates(a, b, H):
    """(R, 4H) + (R, 4H) in PyTorch i,f,g,o order -> (R, 8H) blocks [i_a,i_b,f_a,f_b,g_a,g_b,o_a,o_b]."""
    R = a.shape[0]
    return jnp.stack([a.reshape(R, 4, H), b.reshape(R, 4, H)], axis=2).reshape(R, 8 * H)


def location_model_forward(inp, params):
    """inp: (seq_len, batch=1, input_size) f32. Returns (1, seq_len) like the PyTorch module."""
    seq, batch, input_size = inp.shape
    assert batch == 1, "Location_Model's final reshape implies batch == 1"
    H = params["whh_f"].shape[0]
    G = 8 * H
    x = inp.reshape(seq, input_size).astype(jnp.float32)

    # (seq, 2I): forward-time features next to reversed-time features so one matmul produces
    # per-loop-step gate pre-activations for BOTH directions.
    xcat = jnp.concatenate([x, x[::-1]], axis=1)

    zf = jnp.zeros_like(params["wih_f"])
    zb = jnp.zeros_like(params["wih_b"])
    wih2 = jnp.concatenate(
        [_interleave_gates(params["wih_f"], zb, H),        # rows 0:I  -> fwd gate columns
         _interleave_gates(zf, params["wih_b"], H)],       # rows I:2I -> bwd gate columns
        axis=0)                                            # (2I, 8H)
    b_perm = _interleave_gates(params["b_f"], params["b_b"], H)       # (1, 8H)

    # Block-diagonal recurrent weights: rows 0:H drive fwd gate columns, rows H:2H bwd columns.
    whh_cat = jnp.concatenate(
        [_interleave_gates(params["whh_f"], jnp.zeros_like(params["whh_b"]), H),
         _interleave_gates(jnp.zeros_like(params["whh_f"]), params["whh_b"], H)],
        axis=0).astype(jnp.bfloat16)                       # (2H, 8H)

    wout = params["wout"].reshape(2 * H)
    w_head_f = jnp.zeros((1, G), jnp.float32).at[0, 0:H].set(wout[0:H])
    w_head_b = jnp.zeros((1, G), jnp.float32).at[0, H:2 * H].set(wout[H:2 * H])
    bout_row = jnp.full((1, G), params["bout"][0, 0], jnp.float32)

    slab = jnp.concatenate(
        [wih2, b_perm, w_head_f, w_head_b, bout_row], axis=0).astype(jnp.float32)  # (2I+4, 8H)

    vmem = pl.BlockSpec(memory_space=pltpu.MemorySpace.VMEM)
    out = pl.pallas_call(
        bilstm_kernel,
        out_shape=jax.ShapeDtypeStruct((1, seq), jnp.float32),
        in_specs=[vmem, vmem, vmem],
        out_specs=vmem,
    )(xcat, slab, whh_cat)
    return out


def ref_forward(inp, params):
    """Pure-JAX f32 reference with PyTorch-identical math, for verification."""
    seq, batch, input_size = inp.shape
    x = inp.reshape(seq, input_size).astype(jnp.float32)
    H = params["whh_f"].shape[0]

    def cell(x_t, h, c, wih, whh, b):
        gates = x_t @ wih + h @ whh + b
        i = jax.nn.sigmoid(gates[:, 0:H])
        f = jax.nn.sigmoid(gates[:, H:2 * H])
        g = jnp.tanh(gates[:, 2 * H:3 * H])
        o = jax.nn.sigmoid(gates[:, 3 * H:4 * H])
        c = f * c + i * g
        h = o * jnp.tanh(c)
        return h, c

    def run(xs, wih, whh, b):
        def step(carry, x_t):
            h, c = carry
            h, c = cell(x_t[None, :], h, c, wih, whh, b)
            return (h, c), h[0]
        init = (jnp.zeros((1, H), jnp.float32), jnp.zeros((1, H), jnp.float32))
        _, hs = lax.scan(step, init, xs)
        return hs

    hf = run(x, params["wih_f"], params["whh_f"], params["b_f"])
    hb = run(x[::-1], params["wih_b"], params["whh_b"], params["b_b"])[::-1]
    out = jnp.concatenate([hf, hb], axis=-1)          # (seq, 2H)
    y = out @ params["wout"] + params["bout"][0]      # (seq, 1)
    return y.reshape(1, seq)


def init_params(key, input_size, hidden):
    """Deterministic synthetic parameters mirroring nn.LSTM / nn.Linear shapes & init ranges."""
    ks = jax.random.split(key, 12)
    b_lstm = 1.0 / (hidden ** 0.5)

    def u(k, shape, bound):
        return jax.random.uniform(k, shape, jnp.float32, -bound, bound)

    # PyTorch stores weight_ih as (4H, I); we keep the transposed (I, 4H) for x @ W layout.
    wih_f = u(ks[0], (input_size, 4 * hidden), b_lstm)
    whh_f = u(ks[1], (hidden, 4 * hidden), b_lstm)
    b_f = (u(ks[2], (1, 4 * hidden), b_lstm) + u(ks[3], (1, 4 * hidden), b_lstm))  # b_ih + b_hh
    wih_b = u(ks[4], (input_size, 4 * hidden), b_lstm)
    whh_b = u(ks[5], (hidden, 4 * hidden), b_lstm)
    b_b = (u(ks[6], (1, 4 * hidden), b_lstm) + u(ks[7], (1, 4 * hidden), b_lstm))

    b_lin = 1.0 / ((2 * hidden) ** 0.5)
    wout = u(ks[8], (2 * hidden, 1), b_lin)   # transposed nn.Linear(2H, 1).weight
    bout = u(ks[9], (1, 1), b_lin)

    return dict(wih_f=wih_f, whh_f=whh_f, b_f=b_f,
                wih_b=wih_b, whh_b=whh_b, b_b=b_b,
                wout=wout, bout=bout)


# TODO(synk): self.loss_fn = nn.CrossEntropyLoss() is defined but never used in forward(); not implemented.

if __name__ == "__main__":
    seq_len, batch, input_size, hidden = 8, 1, 16, 32

    key = jax.random.PRNGKey(0)
    k_param, k_inp = jax.random.split(key)
    params = init_params(k_param, input_size, hidden)
    inp = jax.random.normal(k_inp, (seq_len, batch, input_size), jnp.float32)

    out = jax.block_until_ready(location_model_forward(inp, params))
    ref = ref_forward(inp, params)

    assert out.shape == (1, seq_len), f"bad shape {out.shape}"
    assert jnp.allclose(out, ref, atol=5e-3, rtol=5e-3), \
        f"mismatch: max abs err {float(jnp.max(jnp.abs(out - ref)))}"

    print("KERNEL_OK")
</pallas_src>

<mosaic_0001>
module attributes {stable_mosaic.version = 11 : i64} {
  func.func @bilstm_kernel(%arg0: memref<8x32xf32, #tpu.memory_space<vmem>>, %arg1: memref<36x256xf32, #tpu.memory_space<vmem>>, %arg2: memref<64x256xbf16, #tpu.memory_space<vmem>>, %arg3: memref<1x8xf32, #tpu.memory_space<vmem>>) attributes {dimension_semantics = [], scalar_prefetch = 0 : i64, scratch_operands = 0 : i64, tpu.core_type = #tpu.core_type<tc>} {
    %c0 = arith.constant 0 : index
    %c0_0 = arith.constant 0 : index
    %0 = vector.load %arg1[%c0, %c0_0] : memref<36x256xf32, #tpu.memory_space<vmem>>, vector<32x256xf32>
    %c32 = arith.constant 32 : index
    %c0_1 = arith.constant 0 : index
    %1 = vector.load %arg1[%c32, %c0_1] : memref<36x256xf32, #tpu.memory_space<vmem>>, vector<1x256xf32>
    %c0_2 = arith.constant 0 : index
    %c0_3 = arith.constant 0 : index
    %2 = vector.load %arg0[%c0_2, %c0_3] : memref<8x32xf32, #tpu.memory_space<vmem>>, vector<8x32xf32>
    %cst = arith.constant dense<0.000000e+00> : vector<8x256xf32>
    %3 = tpu.matmul %2, %0, %cst {dimension_numbers = #tpu.dot_dimension_numbers<[1], [0], [0], [1], [0, 0, 1, 1], [], []>} : vector<8x32xf32>, vector<32x256xf32>, vector<8x256xf32> -> vector<8x256xf32>
    %4 = vector.broadcast %1 : vector<1x256xf32> to vector<8x256xf32>
    %5 = arith.addf %3, %4 : vector<8x256xf32>
    %c33 = arith.constant 33 : index
    %c0_4 = arith.constant 0 : index
    %6 = vector.load %arg1[%c33, %c0_4] : memref<36x256xf32, #tpu.memory_space<vmem>>, vector<1x64xf32>
    %c34 = arith.constant 34 : index
    %c0_5 = arith.constant 0 : index
    %7 = vector.load %arg1[%c34, %c0_5] : memref<36x256xf32, #tpu.memory_space<vmem>>, vector<1x64xf32>
    %c35 = arith.constant 35 : index
    %c0_6 = arith.constant 0 : index
    %8 = vector.load %arg1[%c35, %c0_6] : memref<36x256xf32, #tpu.memory_space<vmem>>, vector<1x8xf32>
    %c0_7 = arith.constant 0 : index
    %c0_8 = arith.constant 0 : index
    %9 = vector.load %arg2[%c0_7, %c0_8] : memref<64x256xbf16, #tpu.memory_space<vmem>>, vector<64x256xbf16>
    %10 = tpu.iota {dimensions = array<i32: 1>} : vector<1x256xi32>
    %c128_i32 = arith.constant 128 : i32
    %11 = vector.broadcast %c128_i32 : i32 to vector<1x256xi32>
    %12 = arith.cmpi sge, %10, %11 : vector<1x256xi32>
    %c192_i32 = arith.constant 192 : i32
    %13 = vector.broadcast %c192_i32 : i32 to vector<1x256xi32>
    %14 = arith.cmpi slt, %10, %13 : vector<1x256xi32>
    %15 = arith.andi %12, %14 : vector<1x256xi1>
    %16 = tpu.iota {dimensions = array<i32: 1>} : vector<1x8xi32>
    %cst_9 = arith.constant 0.000000e+00 : f32
    %17 = vector.broadcast %cst_9 : f32 to vector<1x64xf32>
    %cst_10 = arith.constant 0.000000e+00 : f32
    %18 = vector.broadcast %cst_10 : f32 to vector<1x64xf32>
    %19 = vector.extract_strided_slice %5 {offsets = [0, 0], sizes = [1, 256], strides = [1, 1]} : vector<8x256xf32> to vector<1x256xf32>
    %20 = arith.truncf %18 : vector<1x64xf32> to vector<1x64xbf16>
    %cst_11 = arith.constant dense<0.000000e+00> : vector<1x256xf32>
    %21 = tpu.matmul %20, %9, %cst_11 {dimension_numbers = #tpu.dot_dimension_numbers<[1], [0], [0], [1], [0, 0, 1, 1], [], []>} : vector<1x64xbf16>, vector<64x256xbf16>, vector<1x256xf32> -> vector<1x256xf32>
    %22 = arith.addf %19, %21 : vector<1x256xf32>
    %23 = math.tanh %22 : vector<1x256xf32>
    %24 = arith.negf %22 : vector<1x256xf32>
    %25 = math.exp %24 : vector<1x256xf32>
    %cst_12 = arith.constant 1.000000e+00 : f32
    %26 = vector.broadcast %cst_12 : f32 to vector<1x256xf32>
    %27 = arith.addf %26, %25 : vector<1x256xf32>
    %28 = arith.divf %26, %27 : vector<1x256xf32>
    %29 = arith.select %15, %23, %28 : vector<1x256xi1>, vector<1x256xf32>
    %30 = vector.extract_strided_slice %29 {offsets = [0, 0], sizes = [1, 64], strides = [1, 1]} : vector<1x256xf32> to vector<1x64xf32>
    %c192_i32_13 = arith.constant 192 : i32
    %31 = tpu.dynamic_rotate %29 by %c192_i32_13 dim 1 : vector<1x256xf32>, i32 -> vector<1x256xf32>
    %32 = vector.extract_strided_slice %31 {offsets = [0, 0], sizes = [1, 64], strides = [1, 1]} : vector<1x256xf32> to vector<1x64xf32>
    %c128_i32_14 = arith.constant 128 : i32
    %33 = tpu.dynamic_rotate %29 by %c128_i32_14 dim 1 : vector<1x256xf32>, i32 -> vector<1x256xf32>
    %34 = vector.extract_strided_slice %33 {offsets = [0, 0], sizes = [1, 64], strides = [1, 1]} : vector<1x256xf32> to vector<1x64xf32>
    %c64_i32 = arith.constant 64 : i32
    %35 = tpu.dynamic_rotate %29 by %c64_i32 dim 1 : vector<1x256xf32>, i32 -> vector<1x256xf32>
    %36 = vector.extract_strided_slice %35 {offsets = [0, 0], sizes = [1, 64], strides = [1, 1]} : vector<1x256xf32> to vector<1x64xf32>
    %37 = arith.mulf %32, %17 : vector<1x64xf32>
    %38 = arith.mulf %30, %34 : vector<1x64xf32>
    %39 = arith.addf %37, %38 : vector<1x64xf32>
    %40 = math.tanh %39 : vector<1x64xf32>
    %41 = arith.mulf %36, %40 : vector<1x64xf32>
    %c0_i32 = arith.constant 0 : i32
    %42 = vector.broadcast %c0_i32 : i32 to vector<1x8xi32>
    %43 = arith.cmpi eq, %16, %42 : vector<1x8xi32>
    %44 = arith.mulf %41, %6 : vector<1x64xf32>
    %cst_15 = arith.constant dense<0.000000e+00> : vector<1xf32>
    %45 = vector.multi_reduction <add>, %44, %cst_15 [1] : vector<1x64xf32> to vector<1xf32>
    %46 = vector.shape_cast %45 : vector<1xf32> to vector<1x1xf32>
    %cst_16 = arith.constant 0.000000e+00 : f32
    %47 = vector.shape_cast %46 : vector<1x1xf32> to vector<1x1xf32>
    %48 = vector.broadcast %47 : vector<1x1xf32> to vector<1x8xf32>
    %49 = vector.broadcast %cst_16 : f32 to vector<1x8xf32>
    %50 = arith.select %43, %48, %49 : vector<1x8xi1>, vector<1x8xf32>
    %51 = arith.addf %8, %50 : vector<1x8xf32>
    %c7_i32 = arith.constant 7 : i32
    %52 = vector.broadcast %c7_i32 : i32 to vector<1x8xi32>
    %53 = arith.cmpi eq, %16, %52 : vector<1x8xi32>
    %54 = arith.mulf %41, %7 : vector<1x64xf32>
    %cst_17 = arith.constant dense<0.000000e+00> : vector<1xf32>
    %55 = vector.multi_reduction <add>, %54, %cst_17 [1] : vector<1x64xf32> to vector<1xf32>
    %56 = vector.shape_cast %55 : vector<1xf32> to vector<1x1xf32>
    %cst_18 = arith.constant 0.000000e+00 : f32
    %57 = vector.shape_cast %56 : vector<1x1xf32> to vector<1x1xf32>
    %58 = vector.broadcast %57 : vector<1x1xf32> to vector<1x8xf32>
    %59 = vector.broadcast %cst_18 : f32 to vector<1x8xf32>
    %60 = arith.select %53, %58, %59 : vector<1x8xi1>, vector<1x8xf32>
    %61 = arith.addf %51, %60 : vector<1x8xf32>
    %62 = vector.extract_strided_slice %5 {offsets = [1, 0], sizes = [1, 256], strides = [1, 1]} : vector<8x256xf32> to vector<1x256xf32>
    %63 = arith.truncf %41 : vector<1x64xf32> to vector<1x64xbf16>
    %cst_19 = arith.constant dense<0.000000e+00> : vector<1x256xf32>
    %64 = tpu.matmul %63, %9, %cst_19 {dimension_numbers = #tpu.dot_dimension_numbers<[1], [0], [0], [1], [0, 0, 1, 1], [], []>} : vector<1x64xbf16>, vector<64x256xbf16>, vector<1x256xf32> -> vector<1x256xf32>
    %65 = arith.addf %62, %64 : vector<1x256xf32>
    %66 = math.tanh %65 : vector<1x256xf32>
    %67 = arith.negf %65 : vector<1x256xf32>
    %68 = math.exp %67 : vector<1x256xf32>
    %cst_20 = arith.constant 1.000000e+00 : f32
    %69 = vector.broadcast %cst_20 : f32 to vector<1x256xf32>
    %70 = arith.addf %69, %68 : vector<1x256xf32>
    %71 = arith.divf %69, %70 : vector<1x256xf32>
    %72 = arith.select %15, %66, %71 : vector<1x256xi1>, vector<1x256xf32>
    %73 = vector.extract_strided_slice %72 {offsets = [0, 0], sizes = [1, 64], strides = [1, 1]} : vector<1x256xf32> to vector<1x64xf32>
    %c192_i32_21 = arith.constant 192 : i32
    %74 = tpu.dynamic_rotate %72 by %c192_i32_21 dim 1 : vector<1x256xf32>, i32 -> vector<1x256xf32>
    %75 = vector.extract_strided_slice %74 {offsets = [0, 0], sizes = [1, 64], strides = [1, 1]} : vector<1x256xf32> to vector<1x64xf32>
    %c128_i32_22 = arith.constant 128 : i32
    %76 = tpu.dynamic_rotate %72 by %c128_i32_22 dim 1 : vector<1x256xf32>, i32 -> vector<1x256xf32>
    %77 = vector.extract_strided_slice %76 {offsets = [0, 0], sizes = [1, 64], strides = [1, 1]} : vector<1x256xf32> to vector<1x64xf32>
    %c64_i32_23 = arith.constant 64 : i32
    %78 = tpu.dynamic_rotate %72 by %c64_i32_23 dim 1 : vector<1x256xf32>, i32 -> vector<1x256xf32>
    %79 = vector.extract_strided_slice %78 {offsets = [0, 0], sizes = [1, 64], strides = [1, 1]} : vector<1x256xf32> to vector<1x64xf32>
    %80 = arith.mulf %75, %39 : vector<1x64xf32>
    %81 = arith.mulf %73, %77 : vector<1x64xf32>
    %82 = arith.addf %80, %81 : vector<1x64xf32>
    %83 = math.tanh %82 : vector<1x64xf32>
    %84 = arith.mulf %79, %83 : vector<1x64xf32>
    %c1_i32 = arith.constant 1 : i32
    %85 = vector.broadcast %c1_i32 : i32 to vector<1x8xi32>
    %86 = arith.cmpi eq, %16, %85 : vector<1x8xi32>
    %87 = arith.mulf %84, %6 : vector<1x64xf32>
    %cst_24 = arith.constant dense<0.000000e+00> : vector<1xf32>
    %88 = vector.multi_reduction <add>, %87, %cst_24 [1] : vector<1x64xf32> to vector<1xf32>
    %89 = vector.shape_cast %88 : vector<1xf32> to vector<1x1xf32>
    %cst_25 = arith.constant 0.000000e+00 : f32
    %90 = vector.shape_cast %89 : vector<1x1xf32> to vector<1x1xf32>
    %91 = vector.broadcast %90 : vector<1x1xf32> to vector<1x8xf32>
    %92 = vector.broadcast %cst_25 : f32 to vector<1x8xf32>
    %93 = arith.select %86, %91, %92 : vector<1x8xi1>, vector<1x8xf32>
    %94 = arith.addf %61, %93 : vector<1x8xf32>
    %c6_i32 = arith.constant 6 : i32
    %95 = vector.broadcast %c6_i32 : i32 to vector<1x8xi32>
    %96 = arith.cmpi eq, %16, %95 : vector<1x8xi32>
    %97 = arith.mulf %84, %7 : vector<1x64xf32>
    %cst_26 = arith.constant dense<0.000000e+00> : vector<1xf32>
    %98 = vector.multi_reduction <add>, %97, %cst_26 [1] : vector<1x64xf32> to vector<1xf32>
    %99 = vector.shape_cast %98 : vector<1xf32> to vector<1x1xf32>
    %cst_27 = arith.constant 0.000000e+00 : f32
    %100 = vector.shape_cast %99 : vector<1x1xf32> to vector<1x1xf32>
    %101 = vector.broadcast %100 : vector<1x1xf32> to vector<1x8xf32>
    %102 = vector.broadcast %cst_27 : f32 to vector<1x8xf32>
    %103 = arith.select %96, %101, %102 : vector<1x8xi1>, vector<1x8xf32>
    %104 = arith.addf %94, %103 : vector<1x8xf32>
    %105 = vector.extract_strided_slice %5 {offsets = [2, 0], sizes = [1, 256], strides = [1, 1]} : vector<8x256xf32> to vector<1x256xf32>
    %106 = arith.truncf %84 : vector<1x64xf32> to vector<1x64xbf16>
    %cst_28 = arith.constant dense<0.000000e+00> : vector<1x256xf32>
    %107 = tpu.matmul %106, %9, %cst_28 {dimension_numbers = #tpu.dot_dimension_numbers<[1], [0], [0], [1], [0, 0, 1, 1], [], []>} : vector<1x64xbf16>, vector<64x256xbf16>, vector<1x256xf32> -> vector<1x256xf32>
    %108 = arith.addf %105, %107 : vector<1x256xf32>
    %109 = math.tanh %108 : vector<1x256xf32>
    %110 = arith.negf %108 : vector<1x256xf32>
    %111 = math.exp %110 : vector<1x256xf32>
    %cst_29 = arith.constant 1.000000e+00 : f32
    %112 = vector.broadcast %cst_29 : f32 to vector<1x256xf32>
    %113 = arith.addf %112, %111 : vector<1x256xf32>
    %114 = arith.divf %112, %113 : vector<1x256xf32>
    %115 = arith.select %15, %109, %114 : vector<1x256xi1>, vector<1x256xf32>
    %116 = vector.extract_strided_slice %115 {offsets = [0, 0], sizes = [1, 64], strides = [1, 1]} : vector<1x256xf32> to vector<1x64xf32>
    %c192_i32_30 = arith.constant 192 : i32
    %117 = tpu.dynamic_rotate %115 by %c192_i32_30 dim 1 : vector<1x256xf32>, i32 -> vector<1x256xf32>
    %118 = vector.extract_strided_slice %117 {offsets = [0, 0], sizes = [1, 64], strides = [1, 1]} : vector<1x256xf32> to vector<1x64xf32>
    %c128_i32_31 = arith.constant 128 : i32
    %119 = tpu.dynamic_rotate %115 by %c128_i32_31 dim 1 : vector<1x256xf32>, i32 -> vector<1x256xf32>
    %120 = vector.extract_strided_slice %119 {offsets = [0, 0], sizes = [1, 64], strides = [1, 1]} : vector<1x256xf32> to vector<1x64xf32>
    %c64_i32_32 = arith.constant 64 : i32
    %121 = tpu.dynamic_rotate %115 by %c64_i32_32 dim 1 : vector<1x256xf32>, i32 -> vector<1x256xf32>
    %122 = vector.extract_strided_slice %121 {offsets = [0, 0], sizes = [1, 64], strides = [1, 1]} : vector<1x256xf32> to vector<1x64xf32>
    %123 = arith.mulf %118, %82 : vector<1x64xf32>
    %124 = arith.mulf %116, %120 : vector<1x64xf32>
    %125 = arith.addf %123, %124 : vector<1x64xf32>
    %126 = math.tanh %125 : vector<1x64xf32>
    %127 = arith.mulf %122, %126 : vector<1x64xf32>
    %c2_i32 = arith.constant 2 : i32
    %128 = vector.broadcast %c2_i32 : i32 to vector<1x8xi32>
    %129 = arith.cmpi eq, %16, %128 : vector<1x8xi32>
    %130 = arith.mulf %127, %6 : vector<1x64xf32>
    %cst_33 = arith.constant dense<0.000000e+00> : vector<1xf32>
    %131 = vector.multi_reduction <add>, %130, %cst_33 [1] : vector<1x64xf32> to vector<1xf32>
    %132 = vector.shape_cast %131 : vector<1xf32> to vector<1x1xf32>
    %cst_34 = arith.constant 0.000000e+00 : f32
    %133 = vector.shape_cast %132 : vector<1x1xf32> to vector<1x1xf32>
    %134 = vector.broadcast %133 : vector<1x1xf32> to vector<1x8xf32>
    %135 = vector.broadcast %cst_34 : f32 to vector<1x8xf32>
    %136 = arith.select %129, %134, %135 : vector<1x8xi1>, vector<1x8xf32>
    %137 = arith.addf %104, %136 : vector<1x8xf32>
    %c5_i32 = arith.constant 5 : i32
    %138 = vector.broadcast %c5_i32 : i32 to vector<1x8xi32>
    %139 = arith.cmpi eq, %16, %138 : vector<1x8xi32>
    %140 = arith.mulf %127, %7 : vector<1x64xf32>
    %cst_35 = arith.constant dense<0.000000e+00> : vector<1xf32>
    %141 = vector.multi_reduction <add>, %140, %cst_35 [1] : vector<1x64xf32> to vector<1xf32>
    %142 = vector.shape_cast %141 : vector<1xf32> to vector<1x1xf32>
    %cst_36 = arith.constant 0.000000e+00 : f32
    %143 = vector.shape_cast %142 : vector<1x1xf32> to vector<1x1xf32>
    %144 = vector.broadcast %143 : vector<1x1xf32> to vector<1x8xf32>
    %145 = vector.broadcast %cst_36 : f32 to vector<1x8xf32>
    %146 = arith.select %139, %144, %145 : vector<1x8xi1>, vector<1x8xf32>
    %147 = arith.addf %137, %146 : vector<1x8xf32>
    %148 = vector.extract_strided_slice %5 {offsets = [3, 0], sizes = [1, 256], strides = [1, 1]} : vector<8x256xf32> to vector<1x256xf32>
    %149 = arith.truncf %127 : vector<1x64xf32> to vector<1x64xbf16>
    %cst_37 = arith.constant dense<0.000000e+00> : vector<1x256xf32>
    %150 = tpu.matmul %149, %9, %cst_37 {dimension_numbers = #tpu.dot_dimension_numbers<[1], [0], [0], [1], [0, 0, 1, 1], [], []>} : vector<1x64xbf16>, vector<64x256xbf16>, vector<1x256xf32> -> vector<1x256xf32>
    %151 = arith.addf %148, %150 : vector<1x256xf32>
    %152 = math.tanh %151 : vector<1x256xf32>
    %153 = arith.negf %151 : vector<1x256xf32>
    %154 = math.exp %153 : vector<1x256xf32>
    %cst_38 = arith.constant 1.000000e+00 : f32
    %155 = vector.broadcast %cst_38 : f32 to vector<1x256xf32>
    %156 = arith.addf %155, %154 : vector<1x256xf32>
    %157 = arith.divf %155, %156 : vector<1x256xf32>
    %158 = arith.select %15, %152, %157 : vector<1x256xi1>, vector<1x256xf32>
    %159 = vector.extract_strided_slice %158 {offsets = [0, 0], sizes = [1, 64], strides = [1, 1]} : vector<1x256xf32> to vector<1x64xf32>
    %c192_i32_39 = arith.constant 192 : i32
    %160 = tpu.dynamic_rotate %158 by %c192_i32_39 dim 1 : vector<1x256xf32>, i32 -> vector<1x256xf32>
    %161 = vector.extract_strided_slice %160 {offsets = [0, 0], sizes = [1, 64], strides = [1, 1]} : vector<1x256xf32> to vector<1x64xf32>
    %c128_i32_40 = arith.constant 128 : i32
    %162 = tpu.dynamic_rotate %158 by %c128_i32_40 dim 1 : vector<1x256xf32>, i32 -> vector<1x256xf32>
    %163 = vector.extract_strided_slice %162 {offsets = [0, 0], sizes = [1, 64], strides = [1, 1]} : vector<1x256xf32> to vector<1x64xf32>
    %c64_i32_41 = arith.constant 64 : i32
    %164 = tpu.dynamic_rotate %158 by %c64_i32_41 dim 1 : vector<1x256xf32>, i32 -> vector<1x256xf32>
    %165 = vector.extract_strided_slice %164 {offsets = [0, 0], sizes = [1, 64], strides = [1, 1]} : vector<1x256xf32> to vector<1x64xf32>
    %166 = arith.mulf %161, %125 : vector<1x64xf32>
    %167 = arith.mulf %159, %163 : vector<1x64xf32>
    %168 = arith.addf %166, %167 : vector<1x64xf32>
    %169 = math.tanh %168 : vector<1x64xf32>
    %170 = arith.mulf %165, %169 : vector<1x64xf32>
    %c3_i32 = arith.constant 3 : i32
    %171 = vector.broadcast %c3_i32 : i32 to vector<1x8xi32>
    %172 = arith.cmpi eq, %16, %171 : vector<1x8xi32>
    %173 = arith.mulf %170, %6 : vector<1x64xf32>
    %cst_42 = arith.constant dense<0.000000e+00> : vector<1xf32>
    %174 = vector.multi_reduction <add>, %173, %cst_42 [1] : vector<1x64xf32> to vector<1xf32>
    %175 = vector.shape_cast %174 : vector<1xf32> to vector<1x1xf32>
    %cst_43 = arith.constant 0.000000e+00 : f32
    %176 = vector.shape_cast %175 : vector<1x1xf32> to vector<1x1xf32>
    %177 = vector.broadcast %176 : vector<1x1xf32> to vector<1x8xf32>
    %178 = vector.broadcast %cst_43 : f32 to vector<1x8xf32>
    %179 = arith.select %172, %177, %178 : vector<1x8xi1>, vector<1x8xf32>
    %180 = arith.addf %147, %179 : vector<1x8xf32>
    %c4_i32 = arith.constant 4 : i32
    %181 = vector.broadcast %c4_i32 : i32 to vector<1x8xi32>
    %182 = arith.cmpi eq, %16, %181 : vector<1x8xi32>
    %183 = arith.mulf %170, %7 : vector<1x64xf32>
    %cst_44 = arith.constant dense<0.000000e+00> : vector<1xf32>
    %184 = vector.multi_reduction <add>, %183, %cst_44 [1] : vector<1x64xf32> to vector<1xf32>
    %185 = vector.shape_cast %184 : vector<1xf32> to vector<1x1xf32>
    %cst_45 = arith.constant 0.000000e+00 : f32
    %186 = vector.shape_cast %185 : vector<1x1xf32> to vector<1x1xf32>
    %187 = vector.broadcast %186 : vector<1x1xf32> to vector<1x8xf32>
    %188 = vector.broadcast %cst_45 : f32 to vector<1x8xf32>
    %189 = arith.select %182, %187, %188 : vector<1x8xi1>, vector<1x8xf32>
    %190 = arith.addf %180, %189 : vector<1x8xf32>
    %191 = vector.extract_strided_slice %5 {offsets = [4, 0], sizes = [1, 256], strides = [1, 1]} : vector<8x256xf32> to vector<1x256xf32>
    %192 = arith.truncf %170 : vector<1x64xf32> to vector<1x64xbf16>
    %cst_46 = arith.constant dense<0.000000e+00> : vector<1x256xf32>
    %193 = tpu.matmul %192, %9, %cst_46 {dimension_numbers = #tpu.dot_dimension_numbers<[1], [0], [0], [1], [0, 0, 1, 1], [], []>} : vector<1x64xbf16>, vector<64x256xbf16>, vector<1x256xf32> -> vector<1x256xf32>
    %194 = arith.addf %191, %193 : vector<1x256xf32>
    %195 = math.tanh %194 : vector<1x256xf32>
    %196 = arith.negf %194 : vector<1x256xf32>
    %197 = math.exp %196 : vector<1x256xf32>
    %cst_47 = arith.constant 1.000000e+00 : f32
    %198 = vector.broadcast %cst_47 : f32 to vector<1x256xf32>
    %199 = arith.addf %198, %197 : vector<1x256xf32>
    %200 = arith.divf %198, %199 : vector<1x256xf32>
    %201 = arith.select %15, %195, %200 : vector<1x256xi1>, vector<1x256xf32>
    %202 = vector.extract_strided_slice %201 {offsets = [0, 0], sizes = [1, 64], strides = [1, 1]} : vector<1x256xf32> to vector<1x64xf32>
    %c192_i32_48 = arith.constant 192 : i32
    %203 = tpu.dynamic_rotate %201 by %c192_i32_48 dim 1 : vector<1x256xf32>, i32 -> vector<1x256xf32>
    %204 = vector.extract_strided_slice %203 {offsets = [0, 0], sizes = [1, 64], strides = [1, 1]} : vector<1x256xf32> to vector<1x64xf32>
    %c128_i32_49 = arith.constant 128 : i32
    %205 = tpu.dynamic_rotate %201 by %c128_i32_49 dim 1 : vector<1x256xf32>, i32 -> vector<1x256xf32>
    %206 = vector.extract_strided_slice %205 {offsets = [0, 0], sizes = [1, 64], strides = [1, 1]} : vector<1x256xf32> to vector<1x64xf32>
    %c64_i32_50 = arith.constant 64 : i32
    %207 = tpu.dynamic_rotate %201 by %c64_i32_50 dim 1 : vector<1x256xf32>, i32 -> vector<1x256xf32>
    %208 = vector.extract_strided_slice %207 {offsets = [0, 0], sizes = [1, 64], strides = [1, 1]} : vector<1x256xf32> to vector<1x64xf32>
    %209 = arith.mulf %204, %168 : vector<1x64xf32>
    %210 = arith.mulf %202, %206 : vector<1x64xf32>
    %211 = arith.addf %209, %210 : vector<1x64xf32>
    %212 = math.tanh %211 : vector<1x64xf32>
    %213 = arith.mulf %208, %212 : vector<1x64xf32>
    %c4_i32_51 = arith.constant 4 : i32
    %214 = vector.broadcast %c4_i32_51 : i32 to vector<1x8xi32>
    %215 = arith.cmpi eq, %16, %214 : vector<1x8xi32>
    %216 = arith.mulf %213, %6 : vector<1x64xf32>
    %cst_52 = arith.constant dense<0.000000e+00> : vector<1xf32>
    %217 = vector.multi_reduction <add>, %216, %cst_52 [1] : vector<1x64xf32> to vector<1xf32>
    %218 = vector.shape_cast %217 : vector<1xf32> to vector<1x1xf32>
    %cst_53 = arith.constant 0.000000e+00 : f32
    %219 = vector.shape_cast %218 : vector<1x1xf32> to vector<1x1xf32>
    %220 = vector.broadcast %219 : vector<1x1xf32> to vector<1x8xf32>
    %221 = vector.broadcast %cst_53 : f32 to vector<1x8xf32>
    %222 = arith.select %215, %220, %221 : vector<1x8xi1>, vector<1x8xf32>
    %223 = arith.addf %190, %222 : vector<1x8xf32>
    %c3_i32_54 = arith.constant 3 : i32
    %224 = vector.broadcast %c3_i32_54 : i32 to vector<1x8xi32>
    %225 = arith.cmpi eq, %16, %224 : vector<1x8xi32>
    %226 = arith.mulf %213, %7 : vector<1x64xf32>
    %cst_55 = arith.constant dense<0.000000e+00> : vector<1xf32>
    %227 = vector.multi_reduction <add>, %226, %cst_55 [1] : vector<1x64xf32> to vector<1xf32>
    %228 = vector.shape_cast %227 : vector<1xf32> to vector<1x1xf32>
    %cst_56 = arith.constant 0.000000e+00 : f32
    %229 = vector.shape_cast %228 : vector<1x1xf32> to vector<1x1xf32>
    %230 = vector.broadcast %229 : vector<1x1xf32> to vector<1x8xf32>
    %231 = vector.broadcast %cst_56 : f32 to vector<1x8xf32>
    %232 = arith.select %225, %230, %231 : vector<1x8xi1>, vector<1x8xf32>
    %233 = arith.addf %223, %232 : vector<1x8xf32>
    %234 = vector.extract_strided_slice %5 {offsets = [5, 0], sizes = [1, 256], strides = [1, 1]} : vector<8x256xf32> to vector<1x256xf32>
    %235 = arith.truncf %213 : vector<1x64xf32> to vector<1x64xbf16>
    %cst_57 = arith.constant dense<0.000000e+00> : vector<1x256xf32>
    %236 = tpu.matmul %235, %9, %cst_57 {dimension_numbers = #tpu.dot_dimension_numbers<[1], [0], [0], [1], [0, 0, 1, 1], [], []>} : vector<1x64xbf16>, vector<64x256xbf16>, vector<1x256xf32> -> vector<1x256xf32>
    %237 = arith.addf %234, %236 : vector<1x256xf32>
    %238 = math.tanh %237 : vector<1x256xf32>
    %239 = arith.negf %237 : vector<1x256xf32>
    %240 = math.exp %239 : vector<1x256xf32>
    %cst_58 = arith.constant 1.000000e+00 : f32
    %241 = vector.broadcast %cst_58 : f32 to vector<1x256xf32>
    %242 = arith.addf %241, %240 : vector<1x256xf32>
    %243 = arith.divf %241, %242 : vector<1x256xf32>
    %244 = arith.select %15, %238, %243 : vector<1x256xi1>, vector<1x256xf32>
    %245 = vector.extract_strided_slice %244 {offsets = [0, 0], sizes = [1, 64], strides = [1, 1]} : vector<1x256xf32> to vector<1x64xf32>
    %c192_i32_59 = arith.constant 192 : i32
    %246 = tpu.dynamic_rotate %244 by %c192_i32_59 dim 1 : vector<1x256xf32>, i32 -> vector<1x256xf32>
    %247 = vector.extract_strided_slice %246 {offsets = [0, 0], sizes = [1, 64], strides = [1, 1]} : vector<1x256xf32> to vector<1x64xf32>
    %c128_i32_60 = arith.constant 128 : i32
    %248 = tpu.dynamic_rotate %244 by %c128_i32_60 dim 1 : vector<1x256xf32>, i32 -> vector<1x256xf32>
    %249 = vector.extract_strided_slice %248 {offsets = [0, 0], sizes = [1, 64], strides = [1, 1]} : vector<1x256xf32> to vector<1x64xf32>
    %c64_i32_61 = arith.constant 64 : i32
    %250 = tpu.dynamic_rotate %244 by %c64_i32_61 dim 1 : vector<1x256xf32>, i32 -> vector<1x256xf32>
    %251 = vector.extract_strided_slice %250 {offsets = [0, 0], sizes = [1, 64], strides = [1, 1]} : vector<1x256xf32> to vector<1x64xf32>
    %252 = arith.mulf %247, %211 : vector<1x64xf32>
    %253 = arith.mulf %245, %249 : vector<1x64xf32>
    %254 = arith.addf %252, %253 : vector<1x64xf32>
    %255 = math.tanh %254 : vector<1x64xf32>
    %256 = arith.mulf %251, %255 : vector<1x64xf32>
    %c5_i32_62 = arith.constant 5 : i32
    %257 = vector.broadcast %c5_i32_62 : i32 to vector<1x8xi32>
    %258 = arith.cmpi eq, %16, %257 : vector<1x8xi32>
    %259 = arith.mulf %256, %6 : vector<1x64xf32>
    %cst_63 = arith.constant dense<0.000000e+00> : vector<1xf32>
    %260 = vector.multi_reduction <add>, %259, %cst_63 [1] : vector<1x64xf32> to vector<1xf32>
    %261 = vector.shape_cast %260 : vector<1xf32> to vector<1x1xf32>
    %cst_64 = arith.constant 0.000000e+00 : f32
    %262 = vector.shape_cast %261 : vector<1x1xf32> to vector<1x1xf32>
    %263 = vector.broadcast %262 : vector<1x1xf32> to vector<1x8xf32>
    %264 = vector.broadcast %cst_64 : f32 to vector<1x8xf32>
    %265 = arith.select %258, %263, %264 : vector<1x8xi1>, vector<1x8xf32>
    %266 = arith.addf %233, %265 : vector<1x8xf32>
    %c2_i32_65 = arith.constant 2 : i32
    %267 = vector.broadcast %c2_i32_65 : i32 to vector<1x8xi32>
    %268 = arith.cmpi eq, %16, %267 : vector<1x8xi32>
    %269 = arith.mulf %256, %7 : vector<1x64xf32>
    %cst_66 = arith.constant dense<0.000000e+00> : vector<1xf32>
    %270 = vector.multi_reduction <add>, %269, %cst_66 [1] : vector<1x64xf32> to vector<1xf32>
    %271 = vector.shape_cast %270 : vector<1xf32> to vector<1x1xf32>
    %cst_67 = arith.constant 0.000000e+00 : f32
    %272 = vector.shape_cast %271 : vector<1x1xf32> to vector<1x1xf32>
    %273 = vector.broadcast %272 : vector<1x1xf32> to vector<1x8xf32>
    %274 = vector.broadcast %cst_67 : f32 to vector<1x8xf32>
    %275 = arith.select %268, %273, %274 : vector<1x8xi1>, vector<1x8xf32>
    %276 = arith.addf %266, %275 : vector<1x8xf32>
    %277 = vector.extract_strided_slice %5 {offsets = [6, 0], sizes = [1, 256], strides = [1, 1]} : vector<8x256xf32> to vector<1x256xf32>
    %278 = arith.truncf %256 : vector<1x64xf32> to vector<1x64xbf16>
    %cst_68 = arith.constant dense<0.000000e+00> : vector<1x256xf32>
    %279 = tpu.matmul %278, %9, %cst_68 {dimension_numbers = #tpu.dot_dimension_numbers<[1], [0], [0], [1], [0, 0, 1, 1], [], []>} : vector<1x64xbf16>, vector<64x256xbf16>, vector<1x256xf32> -> vector<1x256xf32>
    %280 = arith.addf %277, %279 : vector<1x256xf32>
    %281 = math.tanh %280 : vector<1x256xf32>
    %282 = arith.negf %280 : vector<1x256xf32>
    %283 = math.exp %282 : vector<1x256xf32>
    %cst_69 = arith.constant 1.000000e+00 : f32
    %284 = vector.broadcast %cst_69 : f32 to vector<1x256xf32>
    %285 = arith.addf %284, %283 : vector<1x256xf32>
    %286 = arith.divf %284, %285 : vector<1x256xf32>
    %287 = arith.select %15, %281, %286 : vector<1x256xi1>, vector<1x256xf32>
    %288 = vector.extract_strided_slice %287 {offsets = [0, 0], sizes = [1, 64], strides = [1, 1]} : vector<1x256xf32> to vector<1x64xf32>
    %c192_i32_70 = arith.constant 192 : i32
    %289 = tpu.dynamic_rotate %287 by %c192_i32_70 dim 1 : vector<1x256xf32>, i32 -> vector<1x256xf32>
    %290 = vector.extract_strided_slice %289 {offsets = [0, 0], sizes = [1, 64], strides = [1, 1]} : vector<1x256xf32> to vector<1x64xf32>
    %c128_i32_71 = arith.constant 128 : i32
    %291 = tpu.dynamic_rotate %287 by %c128_i32_71 dim 1 : vector<1x256xf32>, i32 -> vector<1x256xf32>
    %292 = vector.extract_strided_slice %291 {offsets = [0, 0], sizes = [1, 64], strides = [1, 1]} : vector<1x256xf32> to vector<1x64xf32>
    %c64_i32_72 = arith.constant 64 : i32
    %293 = tpu.dynamic_rotate %287 by %c64_i32_72 dim 1 : vector<1x256xf32>, i32 -> vector<1x256xf32>
    %294 = vector.extract_strided_slice %293 {offsets = [0, 0], sizes = [1, 64], strides = [1, 1]} : vector<1x256xf32> to vector<1x64xf32>
    %295 = arith.mulf %290, %254 : vector<1x64xf32>
    %296 = arith.mulf %288, %292 : vector<1x64xf32>
    %297 = arith.addf %295, %296 : vector<1x64xf32>
    %298 = math.tanh %297 : vector<1x64xf32>
    %299 = arith.mulf %294, %298 : vector<1x64xf32>
    %c6_i32_73 = arith.constant 6 : i32
    %300 = vector.broadcast %c6_i32_73 : i32 to vector<1x8xi32>
    %301 = arith.cmpi eq, %16, %300 : vector<1x8xi32>
    %302 = arith.mulf %299, %6 : vector<1x64xf32>
    %cst_74 = arith.constant dense<0.000000e+00> : vector<1xf32>
    %303 = vector.multi_reduction <add>, %302, %cst_74 [1] : vector<1x64xf32> to vector<1xf32>
    %304 = vector.shape_cast %303 : vector<1xf32> to vector<1x1xf32>
    %cst_75 = arith.constant 0.000000e+00 : f32
    %305 = vector.shape_cast %304 : vector<1x1xf32> to vector<1x1xf32>
    %306 = vector.broadcast %305 : vector<1x1xf32> to vector<1x8xf32>
    %307 = vector.broadcast %cst_75 : f32 to vector<1x8xf32>
    %308 = arith.select %301, %306, %307 : vector<1x8xi1>, vector<1x8xf32>
    %309 = arith.addf %276, %308 : vector<1x8xf32>
    %c1_i32_76 = arith.constant 1 : i32
    %310 = vector.broadcast %c1_i32_76 : i32 to vector<1x8xi32>
    %311 = arith.cmpi eq, %16, %310 : vector<1x8xi32>
    %312 = arith.mulf %299, %7 : vector<1x64xf32>
    %cst_77 = arith.constant dense<0.000000e+00> : vector<1xf32>
    %313 = vector.multi_reduction <add>, %312, %cst_77 [1] : vector<1x64xf32> to vector<1xf32>
    %314 = vector.shape_cast %313 : vector<1xf32> to vector<1x1xf32>
    %cst_78 = arith.constant 0.000000e+00 : f32
    %315 = vector.shape_cast %314 : vector<1x1xf32> to vector<1x1xf32>
    %316 = vector.broadcast %315 : vector<1x1xf32> to vector<1x8xf32>
    %317 = vector.broadcast %cst_78 : f32 to vector<1x8xf32>
    %318 = arith.select %311, %316, %317 : vector<1x8xi1>, vector<1x8xf32>
    %319 = arith.addf %309, %318 : vector<1x8xf32>
    %320 = vector.extract_strided_slice %5 {offsets = [7, 0], sizes = [1, 256], strides = [1, 1]} : vector<8x256xf32> to vector<1x256xf32>
    %321 = arith.truncf %299 : vector<1x64xf32> to vector<1x64xbf16>
    %cst_79 = arith.constant dense<0.000000e+00> : vector<1x256xf32>
    %322 = tpu.matmul %321, %9, %cst_79 {dimension_numbers = #tpu.dot_dimension_numbers<[1], [0], [0], [1], [0, 0, 1, 1], [], []>} : vector<1x64xbf16>, vector<64x256xbf16>, vector<1x256xf32> -> vector<1x256xf32>
    %323 = arith.addf %320, %322 : vector<1x256xf32>
    %324 = math.tanh %323 : vector<1x256xf32>
    %325 = arith.negf %323 : vector<1x256xf32>
    %326 = math.exp %325 : vector<1x256xf32>
    %cst_80 = arith.constant 1.000000e+00 : f32
    %327 = vector.broadcast %cst_80 : f32 to vector<1x256xf32>
    %328 = arith.addf %327, %326 : vector<1x256xf32>
    %329 = arith.divf %327, %328 : vector<1x256xf32>
    %330 = arith.select %15, %324, %329 : vector<1x256xi1>, vector<1x256xf32>
    %331 = vector.extract_strided_slice %330 {offsets = [0, 0], sizes = [1, 64], strides = [1, 1]} : vector<1x256xf32> to vector<1x64xf32>
    %c192_i32_81 = arith.constant 192 : i32
    %332 = tpu.dynamic_rotate %330 by %c192_i32_81 dim 1 : vector<1x256xf32>, i32 -> vector<1x256xf32>
    %333 = vector.extract_strided_slice %332 {offsets = [0, 0], sizes = [1, 64], strides = [1, 1]} : vector<1x256xf32> to vector<1x64xf32>
    %c128_i32_82 = arith.constant 128 : i32
    %334 = tpu.dynamic_rotate %330 by %c128_i32_82 dim 1 : vector<1x256xf32>, i32 -> vector<1x256xf32>
    %335 = vector.extract_strided_slice %334 {offsets = [0, 0], sizes = [1, 64], strides = [1, 1]} : vector<1x256xf32> to vector<1x64xf32>
    %c64_i32_83 = arith.constant 64 : i32
    %336 = tpu.dynamic_rotate %330 by %c64_i32_83 dim 1 : vector<1x256xf32>, i32 -> vector<1x256xf32>
    %337 = vector.extract_strided_slice %336 {offsets = [0, 0], sizes = [1, 64], strides = [1, 1]} : vector<1x256xf32> to vector<1x64xf32>
    %338 = arith.mulf %333, %297 : vector<1x64xf32>
    %339 = arith.mulf %331, %335 : vector<1x64xf32>
    %340 = arith.addf %338, %339 : vector<1x64xf32>
    %341 = math.tanh %340 : vector<1x64xf32>
    %342 = arith.mulf %337, %341 : vector<1x64xf32>
    %c7_i32_84 = arith.constant 7 : i32
    %343 = vector.broadcast %c7_i32_84 : i32 to vector<1x8xi32>
    %344 = arith.cmpi eq, %16, %343 : vector<1x8xi32>
    %345 = arith.mulf %342, %6 : vector<1x64xf32>
    %cst_85 = arith.constant dense<0.000000e+00> : vector<1xf32>
    %346 = vector.multi_reduction <add>, %345, %cst_85 [1] : vector<1x64xf32> to vector<1xf32>
    %347 = vector.shape_cast %346 : vector<1xf32> to vector<1x1xf32>
    %cst_86 = arith.constant 0.000000e+00 : f32
    %348 = vector.shape_cast %347 : vector<1x1xf32> to vector<1x1xf32>
    %349 = vector.broadcast %348 : vector<1x1xf32> to vector<1x8xf32>
    %350 = vector.broadcast %cst_86 : f32 to vector<1x8xf32>
    %351 = arith.select %344, %349, %350 : vector<1x8xi1>, vector<1x8xf32>
    %352 = arith.addf %319, %351 : vector<1x8xf32>
    %c0_i32_87 = arith.constant 0 : i32
    %353 = vector.broadcast %c0_i32_87 : i32 to vector<1x8xi32>
    %354 = arith.cmpi eq, %16, %353 : vector<1x8xi32>
    %355 = arith.mulf %342, %7 : vector<1x64xf32>
    %cst_88 = arith.constant dense<0.000000e+00> : vector<1xf32>
    %356 = vector.multi_reduction <add>, %355, %cst_88 [1] : vector<1x64xf32> to vector<1xf32>
    %357 = vector.shape_cast %356 : vector<1xf32> to vector<1x1xf32>
    %cst_89 = arith.constant 0.000000e+00 : f32
    %358 = vector.shape_cast %357 : vector<1x1xf32> to vector<1x1xf32>
    %359 = vector.broadcast %358 : vector<1x1xf32> to vector<1x8xf32>
    %360 = vector.broadcast %cst_89 : f32 to vector<1x8xf32>
    %361 = arith.select %354, %359, %360 : vector<1x8xi1>, vector<1x8xf32>
    %362 = arith.addf %352, %361 : vector<1x8xf32>
    %c0_90 = arith.constant 0 : index
    %c0_91 = arith.constant 0 : index
    %363 = vector.load %arg3[%c0_90, %c0_91] : memref<1x8xf32, #tpu.memory_space<vmem>>, vector<1x8xf32>
    tpu.vector_store %arg3[%c0_90, %c0_91], %362 {strides = array<i32>} : memref<1x8xf32, #tpu.memory_space<vmem>>, vector<1x8xf32>,
    return
  }
}

</mosaic_0001>

<bundles_post_ra>
// kernel: tpu_custom_call.1
= control target key start
LH: loop header
LB: loop body
LE: loop exit
PB: predicated region body
PF: predicated region fallthrough
CT: control target
= control target key end

     0   :  { %8 = vsyncpa [#allocation3], 0  ;;  %s1678_s0 = inlined_call_operand.hbm [shape: f32[8,32], index: 0, kind: input, shape index: {}]   ;;  %s1679_s1 = inlined_call_operand.hbm [shape: f32[36,256], index: 1, kind: input, shape index: {}]   ;;  %s1680_s2 = inlined_call_operand.hbm [shape: bf16[64,256], index: 2, kind: input, shape index: {}]   ;;  %s1681_s3 = inlined_call_operand.hbm [shape: f32[1,8], index: 3, kind: output, shape index: {}]  }
   0x1   :  { %9 = vsyncpa [#allocation6], 0 }
   0x2   :  { %10 = vsyncpa [#allocation4], 0  ;;  %s1300_s12 = smov [#allocation5]   ;;  %s1206_s16 = scalar_lea.hbm %s1679_s1, 1280 }
   0x3   :  { %s26_s13 = sshll.u32 %s1300_s12, 4  ;;  %p1207_p0 = scmp.ne.s32.totalorder %s1679_s1, %s1206_s16  ;;  %s27_s13 = int_to_ptr.vmem [resolvable:$true] %s26_s13 }
   0x4   :  { %p1210_p1 = scmp.lt.u32.totalorder %s1206_s16, %s1679_s1 }
   0x6   :  { %p1212_p2 = pnand %p1210_p1, %p1207_p0 }
   0x8   :  { %1215 = shalt.err (!%p1212_p2)
}
   0x9   :  { %s1216_s21 = scalar_lea.vmem %s27_s13, 1280  ;;  %p1221_p4 = scmp.lt.s32.totalorder %s27_s13, %s27_s13 }
   0xa   :  { %p1217_p3 = scmp.ne.s32.totalorder %s27_s13, %s1216_s21  ;;  %p1222_p5 = scmp.lt.s32.totalorder %s1216_s21, %s1216_s21 }
   0xc   :  { %p1223_p6 = por %p1222_p5, %p1221_p4 }
   0xe   :  { %p1224_p7 = pnand %p1223_p6, %p1217_p3 }
  0x10   :  { %1227 = shalt.err (!%p1224_p7)
}
  0x11   :  { %s1301_s22 = smov 256   ;;  %s1302_s23 = smov 16  }
  0x12   :  { %32 = dma.hbm_to_vmem [thread:$0]  %s1679_s1, 1280, %s27_s13, [#allocation6], %s1301_s22, %s1301_s22, %s1302_s23  }
  0x13   :  { %s1303_s26 = smov [#allocation2]   ;;  %s1304_s28 = smov [#allocation7]  }
  0x14   :  { %s17_s27 = sshll.u32 %s1303_s26, 4  ;;  %s38_s29 = sshll.u32 %s1304_s28, 4  ;;  %s18_s27 = int_to_ptr.vmem [resolvable:$true] %s17_s27  ;;  %s39_s29 = int_to_ptr.vmem [resolvable:$true] %s38_s29 }
  0x15   :  { %s1228_s5 = scalar_lea.hbm %s1678_s0, 128 }
  0x16   :  { %p1229_p8 = scmp.ne.s32.totalorder %s1678_s0, %s1228_s5  ;;  %p1232_p9 = scmp.lt.u32.totalorder %s1228_s5, %s1678_s0 }
  0x18   :  { %p1234_p10 = pnand %p1232_p9, %p1229_p8 }
  0x1a   :  { %1237 = shalt.err (!%p1234_p10)
}
  0x1b   :  { %s1238_s1 = scalar_lea.vmem %s18_s27, 128  ;;  %p1243_p12 = scmp.lt.s32.totalorder %s18_s27, %s18_s27 }
  0x1c   :  { %p1239_p11 = scmp.ne.s32.totalorder %s18_s27, %s1238_s1  ;;  %p1244_p13 = scmp.lt.s32.totalorder %s1238_s1, %s1238_s1 }
  0x1e   :  { %p1245_p0 = por %p1244_p13, %p1243_p12 }
  0x20   :  { %p1246_p1 = pnand %p1245_p0, %p1239_p11 }
  0x22   :  { %1249 = shalt.err (!%p1246_p1)
}
  0x23   :  { %20 = dma.hbm_to_vmem [thread:$0]  %s1678_s0, 128, %s18_s27, [#allocation3]  }
  0x24   :  { %s1250_s14 = scalar_lea.hbm %s1680_s2, 1024 }
  0x25   :  { %p1251_p2 = scmp.ne.s32.totalorder %s1680_s2, %s1250_s14  ;;  %p1254_p3 = scmp.lt.u32.totalorder %s1250_s14, %s1680_s2 }
  0x27   :  { %p1256_p4 = pnand %p1254_p3, %p1251_p2 }
  0x29   :  { %1259 = shalt.err (!%p1256_p4)
}
  0x2a   :  { %s1260_s19 = scalar_lea.vmem %s39_s29, 1024  ;;  %p1265_p6 = scmp.lt.s32.totalorder %s39_s29, %s39_s29 }
  0x2b   :  { %p1261_p5 = scmp.ne.s32.totalorder %s39_s29, %s1260_s19  ;;  %p1266_p7 = scmp.lt.s32.totalorder %s1260_s19, %s1260_s19 }
  0x2d   :  { %p1267_p8 = por %p1266_p7, %p1265_p6 }
  0x2f   :  { %p1268_p9 = pnand %p1267_p8, %p1261_p5 }
  0x31   :  { %1271 = shalt.err (!%p1268_p9)
}
  0x32   :  { %s1305_s0 = smov 128   ;;  %s1306_s20 = smov 8  }
  0x33   :  { %44 = dma.hbm_to_vmem [thread:$0]  %s1680_s2, 1024, %s39_s29, [#allocation6], %s1305_s0, %s1305_s0, %s1306_s20  }
  0x34   :  { %1294 = dma.done.wait [#allocation3], 128  }
  0x35   :  { %1295 = vsyncadd [#allocation3], 4294967168 }
  0x36   :  { %1296 = dma.done.wait [#allocation6], 2304  }
  0x37   :  { %1297 = vsyncadd [#allocation6], 4294964992  ;;  %v1307_v0 = vmov 0.0   ;;  %v1308_v1 = vmov 0   ;;  %v1368_v2 = vld [vmem:[#allocation7 + $0x4] ss:$8 sps:$4 sm:$0xff]   ;;  %v67_v23 = vlaneseq }
  0x38   :  { %145 = vmatprep.mubr.f32.mxu0 %v1307_v0  ;;  %248 = vmatprep.mubr.bf16.mxu1 %v1308_v1  ;;  %v1370_v3 = vld [vmem:[#allocation7] ss:$8 sps:$4 sm:$0xff]   ;;  %v1373_v4 = vld [vmem:[#allocation7 + $0x14] ss:$8 sps:$4 sm:$0xff]   ;;  %v1376_v8 = vld [vmem:[#allocation7 + $0x10] ss:$8 sps:$4 sm:$0xff]  }
  0x39   :  { %216 = vmatprep.subr.bf16.mxu1 %v1368_v2  ;;  %v56_v5 = vld [vmem:[#allocation5 + $0x8] sm:$0xff]  ;;  %v58_v6 = vld [vmem:[#allocation5 + $0x18] sm:$0xff]  ;;  %v55_v9 = vld [vmem:[#allocation5] sm:$0xff]  ;;  %vm77_vm0 = vcmask 261120   ;;  %v68_v24 = vshrl.u32 %v67_v23, 7  ;;  %v1419_v46 = vand.u32 127, %v67_v23 }
  0x3a   :  { %217 = vmatpush1.bf16.msra.mxu1 %v1370_v3  ;;  %v1079_v7 = vpack.c.bf16 %v58_v6, %v56_v5  ;;  %v57_v10 = vld [vmem:[#allocation5 + $0x10] sm:$0xff]  ;;  %v60_v13 = vld [vmem:[#allocation5 + $0x28] sm:$0xff]  ;;  %v62_v14 = vld [vmem:[#allocation5 + $0x38] sm:$0xff]  ;;  %s1309_s2 = smov 64   ;;  %vm212_vm3 = vcmask 523264   ;;  %vm289_vm4 = vcmask 516096  }
  0x3b   :  { %218 = vmatprep.subr.bf16.mxu1 %v1373_v4  ;;  %v1081_v11 = vpack.c.bf16 %v57_v10, %v55_v9  ;;  %v1379_v12 = vld [vmem:[#allocation7 + $0x24] ss:$8 sps:$4 sm:$0xff]   ;;  %v1083_v15 = vpack.c.bf16 %v62_v14, %v60_v13  ;;  %v59_v16 = vld [vmem:[#allocation5 + $0x20] sm:$0xff]  ;;  %v1382_v18 = vld [vmem:[#allocation7 + $0x20] ss:$8 sps:$4 sm:$0xff]   ;;  %v69_v25 = vsub.s32 0, %v68_v24 }
  0x3c   :  { %1080 = vmatprep.subr.bf16.mxu0 %v1079_v7  ;;  %v61_v17 = vld [vmem:[#allocation5 + $0x30] sm:$0xff]  ;;  %v1385_v20 = vld [vmem:[#allocation7 + $0x34] ss:$8 sps:$4 sm:$0xff]   ;;  %v65_v21 = vld [vmem:[#allocation2] sm:$0xff]  ;;  %v73_v27 = vsub.s32 1, %v68_v24  ;;  %v1422_v47 = vadd.s32 128, %v1419_v46 }
  0x3d   :  { %1082 = vmatpush1.bf16.msra.mxu0 %v1081_v11  ;;  %v1085_v19 = vpack.c.bf16 %v61_v17, %v59_v16  ;;  %v1388_v22 = vld [vmem:[#allocation7 + $0x30] ss:$8 sps:$4 sm:$0xff]   ;;  %vm279_vm2 = vcmp.lt.s32.totalorder %v1419_v46, 64  ;;  %vm287_vm5 = vcmp.eq.s32.totalorder %v1419_v46, 0  ;;  %vm295_vm6 = vcmp.eq.s32.totalorder %v1419_v46, 7  ;;  %s1310_s23 = smov [#allocation8]  }
  0x3e   :  { %219 = vmatpush1.bf16.msra.mxu1 %v1376_v8  ;;  %1084 = vmatprep.subr.bf16.mxu0 %v1083_v15  ;;  %v64_v26 = vld [vmem:[#allocation5 + $0x40] ss:$8 sm:$0x3]  ;;  %vm169_vm1 = vcmp.lt.s32.totalorder %v1422_v47, 192  ;;  %vm393_vm7 = vcmp.eq.s32.totalorder %v1419_v46, 1  ;;  %vm400_vm8 = vcmp.eq.s32.totalorder %v1419_v46, 6 }
  0x3f   :  { %220 = vmatprep.subr.bf16.mxu1 %v1379_v12  ;;  %v70_v28 = vrot.slane %v64_v26, %v69_v25  ;;  %v74_v29 = vrot.slane %v64_v26, %v73_v27  ;;  %vm498_vm9 = vcmp.eq.s32.totalorder %v1419_v46, 2  ;;  %vm505_vm10 = vcmp.eq.s32.totalorder %v1419_v46, 5  ;;  %s1037_s24 = sshll.u32 %s1310_s23, 4  ;;  %s1038_s24 = int_to_ptr.vmem [resolvable:$true] %s1037_s24 }
  0x40   :  { %vm603_vm11 = vcmp.eq.s32.totalorder %v1419_v46, 3  ;;  %vm610_vm12 = vcmp.eq.s32.totalorder %v1419_v46, 4  ;;  %vm1029_vm13 = vcmask 57344   ;;  %s1272_s25 = scalar_lea.vmem %s1038_s24, 16  ;;  %s1276_s26 = scalar_lea.vmem %s1038_s24, 32 }
  0x41   :  { %1086 = vmatpush1.bf16.msra.mxu0 %v1085_v19  ;;  %p1273_p10 = scmp.ne.s32.totalorder %s1038_s24, %s1272_s25  ;;  %p1277_p11 = scmp.lt.s32.totalorder %s1038_s24, %s1038_s24 }
  0x42   :  { %221 = vmatpush1.bf16.msra.mxu1 %v1382_v18  ;;  %306 = vmatprep.subr.bf16.mxu0 %v1368_v2  ;;  %p1278_p12 = scmp.lt.s32.totalorder %s1276_s26, %s1272_s25 }
  0x43   :  { %222 = vmatprep.subr.bf16.mxu1 %v1385_v20 }
  0x44   :  { %1047 = vmatmul.mubr.msk.f32.vlgmr.msra.gmra.mrb[0].mxu0 %vm77_vm0, %v65_v21  ;;  %p1279_p13 = por %p1278_p12, %p1277_p11 }
  0x45   :  { %307 = vmatpush1.bf16.msra.mxu0 %v1370_v3  ;;  %338 = vmatprep.mubr.bf16.mxu0 %v1308_v1 }
  0x46   :  { %223 = vmatpush1.bf16.msra.mxu1 %v1388_v22  ;;  %308 = vmatprep.subr.bf16.mxu0 %v1373_v4  ;;  %p1280_p0 = pnand %p1279_p13, %p1273_p10 }
  0x47   :  { %411 = vmatprep.subr.bf16.mxu1 %v1368_v2 }
  0x49   :  { %249 = vmatmul.mubr.bf16.vlgmr.msra.gmra.mrb[0].mxu1 %v1308_v1  ;;  %309 = vmatpush1.bf16.msra.mxu0 %v1376_v8 }
  0x4a   :  { %310 = vmatprep.subr.bf16.mxu0 %v1379_v12  ;;  %412 = vmatpush1.bf16.msra.mxu1 %v1370_v3 }
  0x4b   :  { %413 = vmatprep.subr.bf16.mxu1 %v1373_v4  ;;  %443 = vmatprep.mubr.bf16.mxu1 %v1308_v1 }
  0x4d   :  { %311 = vmatpush1.bf16.msra.mxu0 %v1382_v18 }
  0x4e   :  { %312 = vmatprep.subr.bf16.mxu0 %v1385_v20  ;;  %414 = vmatpush1.bf16.msra.mxu1 %v1376_v8 }
  0x4f   :  { %415 = vmatprep.subr.bf16.mxu1 %v1379_v12 }
  0x51   :  { %313 = vmatpush1.bf16.msra.mxu0 %v1388_v22 }
  0x52   :  { %416 = vmatpush1.bf16.msra.mxu1 %v1382_v18  ;;  %516 = vmatprep.subr.bf16.mxu0 %v1368_v2 }
  0x53   :  { %417 = vmatprep.subr.bf16.mxu1 %v1385_v20 }
  0x56   :  { %418 = vmatpush1.bf16.msra.mxu1 %v1388_v22 }
  0x57   :  { %621 = vmatprep.subr.bf16.mxu1 %v1368_v2 }
 0x117   :  { %v147_v30 = vpop.f32.mrb[0].mxu0 }
 0x118   :  { %v149_v31 = vpop.f32.mrb[1].mxu0  ;;  %v1413_v32 = vadd.f32 %v147_v30, %v70_v28 }
 0x119   :  { %v1415_v33 = vadd.f32 %v149_v31, %v74_v29 }
 0x11c   :  { %v250_v34 = vpop.f32.mrb[0].mxu1 }
 0x11d   :  { %v257_v35 = vadd.f32 %v250_v34, %v1413_v32  ;;  %v252_v36 = vpop.f32.mrb[1].mxu1 }
 0x11e   :  { %v258_v37 = vadd.f32 %v252_v36, %v1415_v33  ;;  %v254_v38 = vpop.f32.mrb[2].mxu1 }
 0x11f   :  { %v1056_v39 = vmul.f32 -1.442695, %v257_v35  ;;  %v255_v40 = vpop.f32.mrb[3].mxu1 }
 0x120   :  { %v1057_v41 = vmul.f32 -1.442695, %v258_v37 }
 0x121   :  { %1110 = vpow2.f32 %v1056_v39 }
 0x122   :  { %1112 = vpow2.f32 %v1057_v41 }
 0x123   :  { %1114 = vtanh.f32 %v258_v37 }
 0x12b   :  { %v1111_v42 = vpop.eup %1110 }
 0x12c   :  { %v1113_v43 = vpop.eup %1112  ;;  %v267_v44 = vadd.f32 1.0, %v1111_v42 }
 0x12d   :  { %v268_v45 = vadd.f32 1.0, %v1113_v43  ;;  %v1115_v48 = vpop.eup %1114 }
 0x12e   :  { %1116 = vrcp.f32 %v267_v44 }
 0x12f   :  { %1118 = vrcp.f32 %v268_v45 }
 0x138   :  { %v1117_v49 = vpop.eup %1116 }
 0x139   :  { %v1119_v50 = vpop.eup %1118  ;;  %275 = vrot.lane.b32.xlu0 %v1117_v49, %s1309_s2 }
 0x13a   :  { %v274_v51 = vsel %vm169_vm1, %v1115_v48, %v1119_v50 }
 0x13b   :  { %v283_v52 = vmul.f32 %v1117_v49, %v274_v51 }
 0x13d   :  { %277 = vrot.lane.b32.xlu0 %v274_v51, %s1309_s2 }
 0x1ab   :  { %v276_v53 = vpop.permute.xlu0 %275 }
 0x1af   :  { %v278_v54 = vpop.permute.xlu0 %277 }
 0x1b0   :  { %v280_v55 = vsel %vm279_vm2, %v276_v53, %v278_v54  ;;  %v281_v59 = vsel %vm279_vm2, %v278_v54, %v276_v53 }
 0x1b1   :  { %v282_v56 = vmul.f32 0.0, %v280_v55 }
 0x1b3   :  { %v284_v57 = vadd.f32 %v283_v52, %v282_v56 }
 0x1b5   :  { %1120 = vtanh.f32 %v284_v57 }
 0x1bf   :  { %v1121_v58 = vpop.eup %1120 }
 0x1c0   :  { %v1434_v60 = vmul.f32 %v1121_v58, %v281_v59 }
 0x1c2   :  { %v302_v61 = vpack.c.bf16 %v1434_v60, %v1434_v60 }
 0x1c4   :  { %1058 = vmatmul.mubr.msk.bf16.vlgmr.msra.gmra.mrb[4].mxu0 %vm212_vm3, %v302_v61 }
 0x1c5   :  { %517 = vmatpush1.bf16.msra.mxu0 %v1370_v3  ;;  %548 = vmatprep.mubr.bf16.mxu0 %v1308_v1 }
 0x1c6   :  { %518 = vmatprep.subr.bf16.mxu0 %v1373_v4 }
 0x1c9   :  { %519 = vmatpush1.bf16.msra.mxu0 %v1376_v8 }
 0x1ca   :  { %520 = vmatprep.subr.bf16.mxu0 %v1379_v12 }
 0x1cd   :  { %521 = vmatpush1.bf16.msra.mxu0 %v1382_v18 }
 0x1ce   :  { %522 = vmatprep.subr.bf16.mxu0 %v1385_v20 }
 0x1d1   :  { %523 = vmatpush1.bf16.msra.mxu0 %v1388_v22 }
 0x1d2   :  { %724 = vmatprep.subr.bf16.mxu0 %v1368_v2 }
 0x297   :  { %v340_v62 = vpop.f32.mrb[4].mxu0 }
 0x298   :  { %v349_v63 = vrot.slane %v340_v62, 7  ;;  %v342_v0 = vpop.f32.mrb[5].mxu0 }
 0x299   :  { %v350_v5 = vrot.slane %v342_v0, 7  ;;  %v344_v6 = vpop.f32.mrb[6].mxu0 }
 0x29a   :  { %v353_v7 = vadd.f32 %v349_v63, %v1413_v32  ;;  %v345_v9 = vpop.f32.mrb[7].mxu0 }
 0x29b   :  { %v354_v10 = vadd.f32 %v350_v5, %v1415_v33 }
 0x29c   :  { %v1059_v11 = vmul.f32 -1.442695, %v353_v7 }
 0x29d   :  { %v1060_v13 = vmul.f32 -1.442695, %v354_v10 }
 0x29e   :  { %1122 = vpow2.f32 %v1059_v11 }
 0x29f   :  { %1124 = vpow2.f32 %v1060_v13 }
 0x2a0   :  { %1126 = vtanh.f32 %v354_v10 }
 0x2a8   :  { %v1123_v14 = vpop.eup %1122 }
 0x2a9   :  { %v1125_v15 = vpop.eup %1124  ;;  %v363_v16 = vadd.f32 1.0, %v1123_v14 }
 0x2aa   :  { %v364_v17 = vadd.f32 1.0, %v1125_v15  ;;  %v1127_v19 = vpop.eup %1126 }
 0x2ab   :  { %1128 = vrcp.f32 %v363_v16 }
 0x2ac   :  { %1130 = vrcp.f32 %v364_v17 }
 0x2b5   :  { %v1129_v21 = vpop.eup %1128 }
 0x2b6   :  { %v1131_v23 = vpop.eup %1130  ;;  %v373_v24 = vrot.slane %v1129_v21, 1 }
 0x2b7   :  { %v370_v25 = vsel %vm169_vm1, %v1127_v19, %v1131_v23 }
 0x2b8   :  { %377 = vrot.lane.b32.xlu1 %v373_v24, %s1309_s2  ;;  %v374_v26 = vrot.slane %v370_v25, 1 }
 0x2ba   :  { %v384_v27 = vrot.slane %v374_v26, 7 }
 0x2bc   :  { %379 = vrot.lane.b32.xlu1 %v374_v26, %s1309_s2  ;;  %v386_v28 = vmul.f32 %v1129_v21, %v384_v27 }
 0x2be   :  { %v388_v35 = vrot.slane %v386_v28, 1 }
 0x32a   :  { %v378_v29 = vpop.permute.xlu1 %377 }
 0x32e   :  { %v380_v30 = vpop.permute.xlu1 %379 }
 0x32f   :  { %v381_v31 = vsel %vm279_vm2, %v378_v29, %v380_v30  ;;  %v382_v38 = vsel %vm279_vm2, %v380_v30, %v378_v29 }
 0x330   :  { %v383_v34 = vmul.f32 %v381_v31, %v284_v57 }
 0x332   :  { %v390_v36 = vadd.f32 %v388_v35, %v383_v34 }
 0x334   :  { %1132 = vtanh.f32 %v390_v36 }
 0x33e   :  { %v1133_v37 = vpop.eup %1132 }
 0x33f   :  { %v1458_v39 = vmul.f32 %v1133_v37, %v382_v38 }
 0x341   :  { %v407_v40 = vpack.c.bf16 %v1458_v39, %v1458_v39 }
 0x343   :  { %1061 = vmatmul.mubr.msk.bf16.vlgmr.msra.gmra.mrb[4].mxu1 %vm212_vm3, %v407_v40 }
 0x344   :  { %622 = vmatpush1.bf16.msra.mxu1 %v1370_v3  ;;  %653 = vmatprep.mubr.bf16.mxu1 %v1308_v1 }
 0x345   :  { %623 = vmatprep.subr.bf16.mxu1 %v1373_v4 }
 0x348   :  { %624 = vmatpush1.bf16.msra.mxu1 %v1376_v8 }
 0x349   :  { %625 = vmatprep.subr.bf16.mxu1 %v1379_v12 }
 0x34c   :  { %626 = vmatpush1.bf16.msra.mxu1 %v1382_v18 }
 0x34d   :  { %627 = vmatprep.subr.bf16.mxu1 %v1385_v20 }
 0x350   :  { %628 = vmatpush1.bf16.msra.mxu1 %v1388_v22 }
 0x351   :  { %827 = vmatprep.subr.bf16.mxu1 %v1368_v2 }
 0x416   :  { %v445_v41 = vpop.f32.mrb[4].mxu1 }
 0x417   :  { %v454_v42 = vrot.slane %v445_v41, 6  ;;  %v447_v43 = vpop.f32.mrb[5].mxu1 }
 0x418   :  { %v455_v44 = vrot.slane %v447_v43, 6  ;;  %v449_v45 = vpop.f32.mrb[6].mxu1 }
 0x419   :  { %v458_v48 = vadd.f32 %v454_v42, %v1413_v32  ;;  %v450_v49 = vpop.f32.mrb[7].mxu1 }
 0x41a   :  { %v459_v50 = vadd.f32 %v455_v44, %v1415_v33 }
 0x41b   :  { %v1062_v51 = vmul.f32 -1.442695, %v458_v48 }
 0x41c   :  { %v1063_v52 = vmul.f32 -1.442695, %v459_v50 }
 0x41d   :  { %1134 = vpow2.f32 %v1062_v51 }
 0x41e   :  { %1136 = vpow2.f32 %v1063_v52 }
 0x41f   :  { %1138 = vtanh.f32 %v459_v50 }
 0x427   :  { %v1135_v53 = vpop.eup %1134 }
 0x428   :  { %v1137_v54 = vpop.eup %1136  ;;  %v468_v55 = vadd.f32 1.0, %v1135_v53 }
 0x429   :  { %v469_v56 = vadd.f32 1.0, %v1137_v54  ;;  %v1139_v57 = vpop.eup %1138 }
 0x42a   :  { %1140 = vrcp.f32 %v468_v55 }
 0x42b   :  { %1142 = vrcp.f32 %v469_v56 }
 0x434   :  { %v1141_v58 = vpop.eup %1140 }
 0x435   :  { %v1143_v59 = vpop.eup %1142  ;;  %v478_v61 = vrot.slane %v1141_v58, 2 }
 0x436   :  { %v475_v62 = vsel %vm169_vm1, %v1139_v57, %v1143_v59 }
 0x437   :  { %482 = vrot.lane.b32.xlu0 %v478_v61, %s1309_s2  ;;  %v479_v63 = vrot.slane %v475_v62, 2 }
 0x439   :  { %484 = vrot.lane.b32.xlu1 %v479_v63, %s1309_s2  ;;  %v489_v0 = vrot.slane %v479_v63, 6 }
 0x43b   :  { %v491_v5 = vmul.f32 %v1141_v58, %v489_v0 }
 0x43d   :  { %v493_v11 = vrot.slane %v491_v5, 2 }
 0x4a9   :  { %v483_v6 = vpop.permute.xlu0 %482 }
 0x4ab   :  { %v485_v7 = vpop.permute.xlu1 %484 }
 0x4ac   :  { %v486_v9 = vsel %vm279_vm2, %v483_v6, %v485_v7  ;;  %v487_v15 = vsel %vm279_vm2, %v485_v7, %v483_v6 }
 0x4ad   :  { %v488_v10 = vmul.f32 %v486_v9, %v390_v36 }
 0x4af   :  { %v495_v13 = vadd.f32 %v493_v11, %v488_v10 }
 0x4b1   :  { %1144 = vtanh.f32 %v495_v13 }
 0x4bb   :  { %v1145_v14 = vpop.eup %1144 }
 0x4bc   :  { %v1482_v16 = vmul.f32 %v1145_v14, %v487_v15 }
 0x4be   :  { %v512_v17 = vpack.c.bf16 %v1482_v16, %v1482_v16 }
 0x4c0   :  { %1064 = vmatmul.mubr.msk.bf16.vlgmr.msra.gmra.mrb[8].mxu0 %vm212_vm3, %v512_v17 }
 0x4c1   :  { %725 = vmatpush1.bf16.msra.mxu0 %v1370_v3  ;;  %756 = vmatprep.mubr.bf16.mxu0 %v1308_v1 }
 0x4c2   :  { %726 = vmatprep.subr.bf16.mxu0 %v1373_v4 }
 0x4c5   :  { %727 = vmatpush1.bf16.msra.mxu0 %v1376_v8 }
 0x4c6   :  { %728 = vmatprep.subr.bf16.mxu0 %v1379_v12 }
 0x4c9   :  { %729 = vmatpush1.bf16.msra.mxu0 %v1382_v18 }
 0x4ca   :  { %730 = vmatprep.subr.bf16.mxu0 %v1385_v20 }
 0x4cd   :  { %731 = vmatpush1.bf16.msra.mxu0 %v1388_v22 }
 0x4ce   :  { %930 = vmatprep.subr.bf16.mxu0 %v1368_v2 }
 0x593   :  { %v550_v19 = vpop.f32.mrb[8].mxu0 }
 0x594   :  { %v559_v21 = vrot.slane %v550_v19, 5  ;;  %v552_v23 = vpop.f32.mrb[9].mxu0 }
 0x595   :  { %v560_v24 = vrot.slane %v552_v23, 5  ;;  %v554_v25 = vpop.f32.mrb[10].mxu0 }
 0x596   :  { %v563_v26 = vadd.f32 %v559_v21, %v1413_v32  ;;  %v555_v27 = vpop.f32.mrb[11].mxu0 }
 0x597   :  { %v564_v28 = vadd.f32 %v560_v24, %v1415_v33 }
 0x598   :  { %v1065_v29 = vmul.f32 -1.442695, %v563_v26 }
 0x599   :  { %v1066_v30 = vmul.f32 -1.442695, %v564_v28 }
 0x59a   :  { %1146 = vpow2.f32 %v1065_v29 }
 0x59b   :  { %1148 = vpow2.f32 %v1066_v30 }
 0x59c   :  { %1150 = vtanh.f32 %v564_v28 }
 0x5a4   :  { %v1147_v31 = vpop.eup %1146 }
 0x5a5   :  { %v1149_v34 = vpop.eup %1148  ;;  %v573_v35 = vadd.f32 1.0, %v1147_v31 }
 0x5a6   :  { %v574_v36 = vadd.f32 1.0, %v1149_v34  ;;  %v1151_v2 = vpop.eup %1150 }
 0x5a7   :  { %1152 = vrcp.f32 %v573_v35 }
 0x5a8   :  { %1154 = vrcp.f32 %v574_v36 }
 0x5b1   :  { %v1153_v37 = vpop.eup %1152 }
 0x5b2   :  { %v1155_v38 = vpop.eup %1154  ;;  %v583_v40 = vrot.slane %v1153_v37, 3 }
 0x5b3   :  { %v580_v41 = vsel %vm169_vm1, %v1151_v2, %v1155_v38 }
 0x5b4   :  { %587 = vrot.lane.b32.xlu0 %v583_v40, %s1309_s2  ;;  %v584_v42 = vrot.slane %v580_v41, 3 }
 0x5b6   :  { %589 = vrot.lane.b32.xlu1 %v584_v42, %s1309_s2  ;;  %v594_v43 = vrot.slane %v584_v42, 5 }
 0x5b8   :  { %v596_v44 = vmul.f32 %v1153_v37, %v594_v43 }
 0x5ba   :  { %v598_v51 = vrot.slane %v596_v44, 3 }
 0x626   :  { %v588_v45 = vpop.permute.xlu0 %587 }
 0x628   :  { %v590_v48 = vpop.permute.xlu1 %589 }
 0x629   :  { %v591_v49 = vsel %vm279_vm2, %v588_v45, %v590_v48  ;;  %v592_v54 = vsel %vm279_vm2, %v590_v48, %v588_v45 }
 0x62a   :  { %v593_v50 = vmul.f32 %v591_v49, %v495_v13 }
 0x62c   :  { %v600_v52 = vadd.f32 %v598_v51, %v593_v50 }
 0x62e   :  { %1156 = vtanh.f32 %v600_v52 }
 0x638   :  { %v1157_v53 = vpop.eup %1156 }
 0x639   :  { %v1506_v55 = vmul.f32 %v1157_v53, %v592_v54 }
 0x63b   :  { %v617_v56 = vpack.c.bf16 %v1506_v55, %v1506_v55 }
 0x63d   :  { %1067 = vmatmul.mubr.msk.bf16.vlgmr.msra.gmra.mrb[8].mxu1 %vm212_vm3, %v617_v56 }
 0x63e   :  { %828 = vmatpush1.bf16.msra.mxu1 %v1370_v3  ;;  %859 = vmatprep.mubr.bf16.mxu1 %v1308_v1 }
 0x63f   :  { %829 = vmatprep.subr.bf16.mxu1 %v1373_v4 }
 0x642   :  { %830 = vmatpush1.bf16.msra.mxu1 %v1376_v8 }
 0x643   :  { %831 = vmatprep.subr.bf16.mxu1 %v1379_v12 }
 0x646   :  { %832 = vmatpush1.bf16.msra.mxu1 %v1382_v18 }
 0x647   :  { %833 = vmatprep.subr.bf16.mxu1 %v1385_v20 }
 0x64a   :  { %834 = vmatpush1.bf16.msra.mxu1 %v1388_v22 }
 0x710   :  { %v655_v57 = vpop.f32.mrb[8].mxu1 }
 0x711   :  { %v664_v58 = vrot.slane %v655_v57, 4  ;;  %v657_v59 = vpop.f32.mrb[9].mxu1 }
 0x712   :  { %v665_v61 = vrot.slane %v657_v59, 4  ;;  %v659_v62 = vpop.f32.mrb[10].mxu1 }
 0x713   :  { %v668_v63 = vadd.f32 %v664_v58, %v1413_v32  ;;  %v660_v0 = vpop.f32.mrb[11].mxu1 }
 0x714   :  { %v669_v5 = vadd.f32 %v665_v61, %v1415_v33 }
 0x715   :  { %v1068_v6 = vmul.f32 -1.442695, %v668_v63 }
 0x716   :  { %v1069_v7 = vmul.f32 -1.442695, %v669_v5 }
 0x717   :  { %1158 = vpow2.f32 %v1068_v6 }
 0x718   :  { %1160 = vpow2.f32 %v1069_v7 }
 0x719   :  { %1162 = vtanh.f32 %v669_v5 }
 0x721   :  { %v1159_v9 = vpop.eup %1158 }
 0x722   :  { %v1161_v10 = vpop.eup %1160  ;;  %v678_v11 = vadd.f32 1.0, %v1159_v9 }
 0x723   :  { %v679_v13 = vadd.f32 1.0, %v1161_v10  ;;  %v1163_v14 = vpop.eup %1162 }
 0x724   :  { %1164 = vrcp.f32 %v678_v11 }
 0x725   :  { %1166 = vrcp.f32 %v679_v13 }
 0x72e   :  { %v1165_v15 = vpop.eup %1164 }
 0x72f   :  { %v1167_v17 = vpop.eup %1166  ;;  %v688_v19 = vrot.slane %v1165_v15, 4 }
 0x730   :  { %v685_v21 = vsel %vm169_vm1, %v1163_v14, %v1167_v17 }
 0x731   :  { %692 = vrot.lane.b32.xlu0 %v688_v19, %s1309_s2  ;;  %v689_v23 = vrot.slane %v685_v21, 4 }
 0x733   :  { %694 = vrot.lane.b32.xlu1 %v689_v23, %s1309_s2  ;;  %v699_v24 = vrot.slane %v689_v23, 4 }
 0x735   :  { %v701_v25 = vmul.f32 %v1165_v15, %v699_v24 }
 0x737   :  { %v703_v30 = vrot.slane %v701_v25, 4 }
 0x7a3   :  { %v693_v26 = vpop.permute.xlu0 %692 }
 0x7a5   :  { %v695_v27 = vpop.permute.xlu1 %694 }
 0x7a6   :  { %v696_v28 = vsel %vm279_vm2, %v693_v26, %v695_v27  ;;  %v697_v35 = vsel %vm279_vm2, %v695_v27, %v693_v26 }
 0x7a7   :  { %v698_v29 = vmul.f32 %v696_v28, %v600_v52 }
 0x7a9   :  { %v705_v31 = vadd.f32 %v703_v30, %v698_v29 }
 0x7ab   :  { %1168 = vtanh.f32 %v705_v31 }
 0x7b5   :  { %v1169_v34 = vpop.eup %1168 }
 0x7b6   :  { %v1529_v36 = vmul.f32 %v1169_v34, %v697_v35 }
 0x7b8   :  { %v720_v2 = vpack.c.bf16 %v1529_v36, %v1529_v36 }
 0x7ba   :  { %1070 = vmatmul.mubr.msk.bf16.vlgmr.msra.gmra.mrb[12].mxu0 %vm212_vm3, %v720_v2  ;;  %v1566_v2 = vld [vmem:[#allocation5 + $0x41] ss:$0 sm:$0xff] }
 0x7bb   :  { %931 = vmatpush1.bf16.msra.mxu0 %v1370_v3  ;;  %962 = vmatprep.mubr.bf16.mxu0 %v1308_v1 }
 0x7bc   :  { %932 = vmatprep.subr.bf16.mxu0 %v1373_v4 }
 0x7bf   :  { %933 = vmatpush1.bf16.msra.mxu0 %v1376_v8 }
 0x7c0   :  { %934 = vmatprep.subr.bf16.mxu0 %v1379_v12 }
 0x7c3   :  { %935 = vmatpush1.bf16.msra.mxu0 %v1382_v18 }
 0x7c4   :  { %936 = vmatprep.subr.bf16.mxu0 %v1385_v20 }
 0x7c7   :  { %937 = vmatpush1.bf16.msra.mxu0 %v1388_v22 }
 0x88d   :  { %v758_v37 = vpop.f32.mrb[12].mxu0 }
 0x88e   :  { %v767_v38 = vrot.slane %v758_v37, 3  ;;  %v760_v40 = vpop.f32.mrb[13].mxu0  ;;  %v288_v37 = vmul.f32 %v1434_v60, %v1566_v2 }
 0x88f   :  { %v768_v41 = vrot.slane %v760_v40, 3  ;;  %v762_v42 = vpop.f32.mrb[14].mxu0  ;;  %v394_v40 = vmul.f32 %v1458_v39, %v1566_v2 }
 0x890   :  { %v771_v3 = vadd.f32 %v767_v38, %v1413_v32  ;;  %v763_v1 = vpop.f32.mrb[15].mxu0  ;;  %v290_v38 = vsel %vm289_vm4, %v288_v37, 0.0 }
 0x891   :  { %v772_v4 = vadd.f32 %v768_v41, %v1415_v33  ;;  %v1573_v41 = vld [vmem:[#allocation5 + $0x42] ss:$0 sm:$0xff] }
 0x892   :  { %v1071_v43 = vmul.f32 -1.442695, %v771_v3  ;;  %v296_v42 = vmul.f32 %v1434_v60, %v1573_v41  ;;  %v395_v3 = vsel %vm289_vm4, %v394_v40, 0.0  ;;  %v401_v1 = vmul.f32 %v1458_v39, %v1573_v41 }
 0x893   :  { %v1072_v8 = vmul.f32 -1.442695, %v772_v4 }
 0x894   :  { %1170 = vpow2.f32 %v1071_v43  ;;  %v499_v43 = vmul.f32 %v1482_v16, %v1566_v2 }
 0x895   :  { %1172 = vpow2.f32 %v1072_v8  ;;  %v402_v8 = vsel %vm289_vm4, %v401_v1, 0.0 }
 0x896   :  { %1174 = vtanh.f32 %v772_v4  ;;  %v297_v4 = vsel %vm289_vm4, %v296_v42, 0.0  ;;  %v500_v60 = vsel %vm289_vm4, %v499_v43, 0.0 }
 0x89e   :  { %v1171_v12 = vpop.eup %1170 }
 0x89f   :  { %v1173_v18 = vpop.eup %1172  ;;  %v781_v44 = vadd.f32 1.0, %v1171_v12  ;;  %v506_v12 = vmul.f32 %v1482_v16, %v1573_v41 }
 0x8a0   :  { %v782_v20 = vadd.f32 1.0, %v1173_v18  ;;  %v1175_v22 = vpop.eup %1174  ;;  %v604_v18 = vmul.f32 %v1506_v55, %v1566_v2 }
 0x8a1   :  { %1176 = vrcp.f32 %v781_v44  ;;  %v507_v39 = vsel %vm289_vm4, %v506_v12, 0.0  ;;  %v611_v44 = vmul.f32 %v1506_v55, %v1573_v41 }
 0x8a2   :  { %1178 = vrcp.f32 %v782_v20  ;;  %v605_v20 = vsel %vm289_vm4, %v604_v18, 0.0 }
 0x8a3   :  { %v612_v16 = vsel %vm289_vm4, %v611_v44, 0.0 }
 0x8ab   :  { %v1177_v45 = vpop.eup %1176 }
 0x8ac   :  { %v1179_v48 = vpop.eup %1178  ;;  %v791_v49 = vrot.slane %v1177_v45, 5 }
 0x8ad   :  { %v788_v50 = vsel %vm169_vm1, %v1175_v22, %v1179_v48  ;;  %v708_v22 = vmul.f32 %v1529_v36, %v1566_v2 }
 0x8ae   :  { %795 = vrot.lane.b32.xlu0 %v791_v49, %s1309_s2  ;;  %v792_v51 = vrot.slane %v788_v50, 5 }
 0x8af   :  { %v709_v48 = vsel %vm289_vm4, %v708_v22, 0.0 }
 0x8b0   :  { %797 = vrot.lane.b32.xlu1 %v792_v51, %s1309_s2  ;;  %v802_v52 = vrot.slane %v792_v51, 3 }
 0x8b2   :  { %v804_v53 = vmul.f32 %v1177_v45, %v802_v52  ;;  %v714_v45 = vmul.f32 %v1529_v36, %v1573_v41 }
 0x8b4   :  { %v806_v59 = vrot.slane %v804_v53, 5  ;;  %v715_v55 = vsel %vm289_vm4, %v714_v45, 0.0 }
 0x920   :  { %v796_v54 = vpop.permute.xlu0 %795 }
 0x922   :  { %v798_v56 = vpop.permute.xlu1 %797 }
 0x923   :  { %v799_v57 = vsel %vm279_vm2, %v796_v54, %v798_v56  ;;  %v800_v63 = vsel %vm279_vm2, %v798_v56, %v796_v54 }
 0x924   :  { %v801_v58 = vmul.f32 %v799_v57, %v705_v31 }
 0x926   :  { %v1550_v61 = vadd.f32 %v806_v59, %v801_v58 }
 0x928   :  { %1180 = vtanh.f32 %v1550_v61 }
 0x932   :  { %v1181_v62 = vpop.eup %1180 }
 0x933   :  { %v1555_v0 = vmul.f32 %v1181_v62, %v800_v63 }
 0x935   :  { %v823_v5 = vpack.c.bf16 %v1555_v0, %v1555_v0  ;;  %v811_v49 = vmul.f32 %v1555_v0, %v1566_v2  ;;  %v817_v50 = vmul.f32 %v1555_v0, %v1573_v41 }
 0x937   :  { %1073 = vmatmul.mubr.msk.bf16.vlgmr.msra.gmra.mrb[12].mxu1 %vm212_vm3, %v823_v5  ;;  %v812_v51 = vsel %vm289_vm4, %v811_v49, 0.0  ;;  %v818_v52 = vsel %vm289_vm4, %v817_v50, 0.0 }
 0xa0a   :  { %v861_v6 = vpop.f32.mrb[12].mxu1 }
 0xa0b   :  { %v870_v7 = vrot.slane %v861_v6, 2  ;;  %v863_v9 = vpop.f32.mrb[13].mxu1 }
 0xa0c   :  { %v871_v10 = vrot.slane %v863_v9, 2  ;;  %v865_v11 = vpop.f32.mrb[14].mxu1 }
 0xa0d   :  { %v874_v13 = vadd.f32 %v870_v7, %v1413_v32  ;;  %v866_v14 = vpop.f32.mrb[15].mxu1 }
 0xa0e   :  { %v875_v15 = vadd.f32 %v871_v10, %v1415_v33  ;;  %v154_v10 = vld [vmem:[#allocation5 + $0x43] ss:$0 sm:$0xff] }
 0xa0f   :  { %v1074_v17 = vmul.f32 -1.442695, %v874_v13 }
 0xa10   :  { %v1075_v19 = vmul.f32 -1.442695, %v875_v15 }
 0xa11   :  { %1182 = vpow2.f32 %v1074_v17 }
 0xa12   :  { %1184 = vpow2.f32 %v1075_v19 }
 0xa13   :  { %1186 = vtanh.f32 %v875_v15 }
 0xa1b   :  { %v1183_v21 = vpop.eup %1182 }
 0xa1c   :  { %v1185_v23 = vpop.eup %1184  ;;  %v884_v24 = vadd.f32 1.0, %v1183_v21 }
 0xa1d   :  { %v885_v25 = vadd.f32 1.0, %v1185_v23  ;;  %v1187_v26 = vpop.eup %1186 }
 0xa1e   :  { %1188 = vrcp.f32 %v884_v24 }
 0xa1f   :  { %1190 = vrcp.f32 %v885_v25 }
 0xa28   :  { %v1189_v27 = vpop.eup %1188 }
 0xa29   :  { %v1191_v28 = vpop.eup %1190  ;;  %v894_v29 = vrot.slane %v1189_v27, 6 }
 0xa2a   :  { %v891_v30 = vsel %vm169_vm1, %v1187_v26, %v1191_v28 }
 0xa2b   :  { %898 = vrot.lane.b32.xlu0 %v894_v29, %s1309_s2  ;;  %v895_v31 = vrot.slane %v891_v30, 6 }
 0xa2d   :  { %900 = vrot.lane.b32.xlu1 %v895_v31, %s1309_s2  ;;  %v905_v34 = vrot.slane %v895_v31, 2 }
 0xa2f   :  { %v907_v35 = vmul.f32 %v1189_v27, %v905_v34 }
 0xa31   :  { %v909_v57 = vrot.slane %v907_v35, 6 }
 0xa4a   :  { %291 = vadd.xlane.f32.xlu0 %v290_v38 }
 0xa4e   :  { %396 = vadd.xlane.f32.xlu0 %v395_v3 }
 0xa51   :  { %298 = vadd.xlane.f32.xlu1 %v297_v4 }
 0xa52   :  { %403 = vadd.xlane.f32.xlu0 %v402_v8 }
 0xa55   :  { %501 = vadd.xlane.f32.xlu1 %v500_v60 }
 0xa56   :  { %508 = vadd.xlane.f32.xlu0 %v507_v39 }
 0xa59   :  { %606 = vadd.xlane.f32.xlu1 %v605_v20 }
 0xa5a   :  { %613 = vadd.xlane.f32.xlu0 %v612_v16 }
 0xa5d   :  { %710 = vadd.xlane.f32.xlu1 %v709_v48 }
 0xa5e   :  { %716 = vadd.xlane.f32.xlu0 %v715_v55 }
 0xa61   :  { %813 = vadd.xlane.f32.xlu1 %v812_v51 }
 0xa62   :  { %819 = vadd.xlane.f32.xlu0 %v818_v52 }
 0xa9d   :  { %v899_v36 = vpop.permute.xlu0 %898 }
 0xa9f   :  { %v901_v53 = vpop.permute.xlu1 %900 }
 0xaa0   :  { %v902_v54 = vsel %vm279_vm2, %v899_v36, %v901_v53  ;;  %v903_v62 = vsel %vm279_vm2, %v901_v53, %v899_v36 }
 0xaa1   :  { %v904_v56 = vmul.f32 %v902_v54, %v1550_v61 }
 0xaa3   :  { %v1609_v58 = vadd.f32 %v909_v57, %v904_v56 }
 0xaa5   :  { %1192 = vtanh.f32 %v1609_v58 }
 0xaaf   :  { %v1193_v59 = vpop.eup %1192 }
 0xab0   :  { %v913_v63 = vmul.f32 %v1193_v59, %v903_v62 }
 0xab2   :  { %v926_v0 = vpack.c.bf16 %v913_v63, %v913_v63  ;;  %v914_v5 = vmul.f32 %v913_v63, %v1566_v2  ;;  %v920_v6 = vmul.f32 %v913_v63, %v1573_v41 }
 0xab4   :  { %1076 = vmatmul.mubr.msk.bf16.vlgmr.msra.gmra.mrb[16].mxu0 %vm212_vm3, %v926_v0  ;;  %v915_v7 = vsel %vm289_vm4, %v914_v5, 0.0  ;;  %v921_v61 = vsel %vm289_vm4, %v920_v6, 0.0 }
 0xab5   :  { %916 = vadd.xlane.f32.xlu1 %v915_v7  ;;  %922 = vadd.xlane.f32.xlu0 %v921_v61 }
 0xad7   :  { %v292_v9 = vpop.xlane.xlu0 %291 }
 0xad8   :  { %v293_v11 = vsel %vm287_vm5, %v292_v9, 0.0 }
 0xad9   :  { %v294_v14 = vadd.f32 %v293_v11, %v154_v10 }
 0xadb   :  { %v397_v13 = vpop.xlane.xlu0 %396 }
 0xadc   :  { %v398_v23 = vsel %vm393_vm7, %v397_v13, 0.0 }
 0xade   :  { %v299_v15 = vpop.xlane.xlu1 %298 }
 0xadf   :  { %v300_v17 = vsel %vm295_vm6, %v299_v15, 0.0  ;;  %v404_v19 = vpop.xlane.xlu0 %403 }
 0xae0   :  { %v301_v21 = vadd.f32 %v300_v17, %v294_v14  ;;  %v405_v26 = vsel %vm400_vm8, %v404_v19, 0.0 }
 0xae2   :  { %v399_v24 = vadd.f32 %v398_v23, %v301_v21  ;;  %v502_v25 = vpop.xlane.xlu1 %501 }
 0xae3   :  { %v509_v27 = vpop.xlane.xlu0 %508  ;;  %v503_v29 = vsel %vm498_vm9, %v502_v25, 0.0 }
 0xae4   :  { %v406_v28 = vadd.f32 %v405_v26, %v399_v24  ;;  %v510_v34 = vsel %vm505_vm10, %v509_v27, 0.0 }
 0xae6   :  { %v504_v30 = vadd.f32 %v503_v29, %v406_v28  ;;  %v607_v31 = vpop.xlane.xlu1 %606 }
 0xae7   :  { %v614_v35 = vpop.xlane.xlu0 %613  ;;  %v608_v38 = vsel %vm603_vm11, %v607_v31, 0.0 }
 0xae8   :  { %v511_v37 = vadd.f32 %v510_v34, %v504_v30  ;;  %v615_v3 = vsel %vm610_vm12, %v614_v35, 0.0 }
 0xaea   :  { %v609_v40 = vadd.f32 %v608_v38, %v511_v37  ;;  %v711_v42 = vpop.xlane.xlu1 %710 }
 0xaeb   :  { %v717_v4 = vpop.xlane.xlu0 %716  ;;  %v712_v43 = vsel %vm610_vm12, %v711_v42, 0.0 }
 0xaec   :  { %v616_v1 = vadd.f32 %v615_v3, %v609_v40  ;;  %v718_v12 = vsel %vm603_vm11, %v717_v4, 0.0 }
 0xaee   :  { %v713_v8 = vadd.f32 %v712_v43, %v616_v1  ;;  %v814_v63 = vpop.xlane.xlu1 %813 }
 0xaef   :  { %v820_v0 = vpop.xlane.xlu0 %819 }
 0xaf0   :  { %v719_v60 = vadd.f32 %v718_v12, %v713_v8  ;;  %v821_v25 = vsel %vm498_vm9, %v820_v0, 0.0 }
 0xb42   :  { %v917_v5 = vpop.xlane.xlu1 %916  ;;  %v923_v6 = vpop.xlane.xlu0 %922 }
 0xb43   :  { %v918_v26 = vsel %vm400_vm8, %v917_v5, 0.0 }
 0xb87   :  { %v964_v18 = vpop.f32.mrb[16].mxu0 }
 0xb88   :  { %v973_v39 = vrot.slane %v964_v18, 1  ;;  %v966_v44 = vpop.f32.mrb[17].mxu0 }
 0xb89   :  { %v974_v20 = vrot.slane %v966_v44, 1  ;;  %v968_v22 = vpop.f32.mrb[18].mxu0 }
 0xb8a   :  { %v977_v16 = vadd.f32 %v973_v39, %v1413_v32  ;;  %v969_v45 = vpop.f32.mrb[19].mxu0 }
 0xb8b   :  { %v978_v48 = vadd.f32 %v974_v20, %v1415_v33 }
 0xb8c   :  { %v1077_v49 = vmul.f32 -1.442695, %v977_v16 }
 0xb8d   :  { %v1078_v55 = vmul.f32 -1.442695, %v978_v48 }
 0xb8e   :  { %1194 = vpow2.f32 %v1077_v49 }
 0xb8f   :  { %1196 = vpow2.f32 %v1078_v55 }
 0xb90   :  { %1198 = vtanh.f32 %v978_v48 }
 0xb98   :  { %v1195_v50 = vpop.eup %1194 }
 0xb99   :  { %v1197_v51 = vpop.eup %1196  ;;  %v987_v52 = vadd.f32 1.0, %v1195_v50 }
 0xb9a   :  { %v988_v36 = vadd.f32 1.0, %v1197_v51  ;;  %v1199_v53 = vpop.eup %1198 }
 0xb9b   :  { %1200 = vrcp.f32 %v987_v52 }
 0xb9c   :  { %1202 = vrcp.f32 %v988_v36 }
 0xba5   :  { %v1201_v54 = vpop.eup %1200 }
 0xba6   :  { %v1203_v56 = vpop.eup %1202  ;;  %v997_v57 = vrot.slane %v1201_v54, 7 }
 0xba7   :  { %v994_v32 = vsel %vm169_vm1, %v1199_v53, %v1203_v56 }
 0xba8   :  { %1001 = vrot.lane.b32.xlu1 %v997_v57, %s1309_s2  ;;  %v998_v33 = vrot.slane %v994_v32, 7 }
 0xbaa   :  { %v1008_v59 = vrot.slane %v998_v33, 1  ;;  %1003 = vrot.lane.b32.xlu0 %v998_v33, %s1309_s2 }
 0xbac   :  { %v1010_v62 = vmul.f32 %v1201_v54, %v1008_v59 }
 0xbae   :  { %v1012_v10 = vrot.slane %v1010_v62, 7 }
 0xc1a   :  { %v1002_v7 = vpop.permute.xlu1 %1001 }
 0xc1c   :  { %v1004_v61 = vpop.permute.xlu0 %1003 }
 0xc1d   :  { %v1005_v9 = vsel %vm279_vm2, %v1002_v7, %v1004_v61  ;;  %v1006_v14 = vsel %vm279_vm2, %v1004_v61, %v1002_v7 }
 0xc1e   :  { %v1007_v47 = vmul.f32 %v1005_v9, %v1609_v58  ;;  %v815_v58 = vsel %vm505_vm10, %v814_v63, 0.0 }
 0xc1f   :  { %v816_v24 = vadd.f32 %v815_v58, %v719_v60 }
 0xc20   :  { %v1014_v11 = vadd.f32 %v1012_v10, %v1007_v47 }
 0xc21   :  { %v822_v27 = vadd.f32 %v821_v25, %v816_v24 }
 0xc22   :  { %1204 = vtanh.f32 %v1014_v11 }
 0xc2c   :  { %v1205_v13 = vpop.eup %1204 }
 0xc2d   :  { %v1016_v15 = vmul.f32 %v1205_v13, %v1006_v14 }
 0xc2f   :  { %v1023_v17 = vmul.f32 %v1016_v15, %v1573_v41  ;;  %v1017_v19 = vmul.f32 %v1016_v15, %v1566_v2  ;;  %v919_v41 = vadd.f32 %v918_v26, %v822_v27  ;;  %v924_v2 = vsel %vm393_vm7, %v923_v6, 0.0 }
 0xc31   :  { %v1024_v21 = vsel %vm289_vm4, %v1023_v17, 0.0  ;;  %v1018_v23 = vsel %vm289_vm4, %v1017_v19, 0.0  ;;  %v925_v28 = vadd.f32 %v924_v2, %v919_v41 }
 0xc32   :  { %1025 = vadd.xlane.f32.xlu0 %v1024_v21  ;;  %1019 = vadd.xlane.f32.xlu1 %v1018_v23 }
 0xcbf   :  { %v1026_v29 = vpop.xlane.xlu0 %1025  ;;  %v1020_v30 = vpop.xlane.xlu1 %1019 }
 0xcc0   :  { %v1021_v31 = vsel %vm295_vm6, %v1020_v30, 0.0  ;;  %v1027_v35 = vsel %vm287_vm5, %v1026_v29, 0.0 }
 0xcc1   :  { %v1022_v34 = vadd.f32 %v1021_v31, %v925_v28 }
 0xcc3   :  { %v1028_v37 = vadd.f32 %v1027_v35, %v1022_v34 }
 0xcc5   :  { %1030 = vst.msk [vmem:[#allocation8] sm:$0x1] %vm1029_vm13, %v1028_v37 }
 0xcc6   :  { %1283 = shalt.err (!%p1280_p0)
}
 0xcc7   :  { %s1284_s29 = scalar_lea.hbm %s1681_s3, 16 }
 0xcc8   :  { %p1285_p1 = scmp.ne.s32.totalorder %s1681_s3, %s1284_s29  ;;  %p1288_p2 = scmp.lt.u32.totalorder %s1284_s29, %s1681_s3 }
 0xcca   :  { %p1290_p3 = pnand %p1288_p2, %p1285_p1 }
 0xccc   :  { %1293 = shalt.err (!%p1290_p3)
}
 0xccd   :  { %1040 = dma.vmem_to_hbm [thread:$0]  %s1038_s24, 16, %s1681_s3, [#allocation4]  }
 0xcce   :  { %1298 = dma.done.wait [#allocation4], 16  }
 0xccf   :  { %1299 = vsyncadd [#allocation4], 4294967280 }
 0xcd0   :  { %1044 = vsyncpa [#allocation3], 1 }
 0xcd1   :  { %1045 = vsyncpa [#allocation6], 1 }
 0xcd2   :  { %1046 = vsyncpa [#allocation4], 1 }

</bundles_post_ra>
